<compile_context>
chip_gen: v5e
topology: v5e:2x2
jax: 0.10.0
libtpu: 0.0.40
codegen_flags: <defaults>
</compile_context>

<pallas_src>
import functools

import jax
import jax.numpy as jnp
from jax import lax
from jax.experimental import pallas as pl
from jax.experimental.pallas import tpu as pltpu

_LANES = 128
_VMEM_LIMIT = 48 * 1024 * 1024  # fits v5e/v6e (128 MiB) and v7x (64 MiB) VMEM


def _conv_stats_kernel(x_ref, w_ref, y_ref, sum_ref, sq_ref, *, KH, KW):
    """Pass 1: 3x3 conv as one im2col matmul + per-image sum / sum-of-squares.

    x_ref  : (1, H+2p, W+2p, Cin)       padded image block (compute dtype)
    w_ref  : (KH*KW*Cin, Cout_p)        weight slab (compute dtype)
    y_ref  : (1, H*W, Cout_p)           conv output, lane-dense (store dtype)
    sum_ref: (1, 1, Cout_p)   fp32      per-image column sums
    sq_ref : (1, 1, Cout_p)   fp32      per-image column sums of squares
    """
    _, Hp, Wp, Cin = x_ref.shape
    Ho = Hp - KH + 1
    Wo = Wp - KW + 1

    # im2col: concatenate the KH*KW shifted windows along channels so the whole
    # conv is a single matmul with contraction K = KH*KW*Cin (one MXU push
    # instead of KH*KW small-K matmuls).
    x = x_ref[0]                                               # (Hp, Wp, Cin)
    taps = []
    for kh in range(KH):
        for kw in range(KW):
            taps.append(x[kh:kh + Ho, kw:kw + Wo, :])          # (Ho, Wo, Cin)
    patch = jnp.concatenate(taps, axis=-1)                     # (Ho, Wo, K)
    patch = patch.reshape(Ho * Wo, KH * KW * Cin)              # (HW, K)

    conv = jnp.dot(patch, w_ref[...],
                   preferred_element_type=jnp.float32)         # (HW, Cout_p) f32

    y_ref[0] = conv.astype(y_ref.dtype)
    # BN partials always accumulated in fp32 from the fp32 MXU accumulator.
    sum_ref[0] = jnp.sum(conv, axis=0, keepdims=True)
    sq_ref[0] = jnp.sum(conv * conv, axis=0, keepdims=True)


def _bn_relu_kernel(y_ref, scale_ref, shift_ref, o_ref):
    """Pass 2: y * scale + shift, then ReLU (one FMA + max per element)."""
    y = y_ref[0].astype(jnp.float32)                           # (HW, Cout_p)
    o_ref[0] = jnp.maximum(y * scale_ref[...] + shift_ref[...], 0.0)


def conv_block(x_nchw, w_oihw, conv_bias, gamma, beta, *,
               eps: float = 1e-5, padding: int = 1,
               compute_dtype=jnp.float32):
    """ConvBlock forward: Conv2d(3x3, s1, p1) + BatchNorm2d(train) + ReLU.

    x_nchw: (N, Cin, H, W) -> (N, Cout, H, W), fp32 in / fp32 out.
    """
    # TODO(synk): stride > 1 not implemented (module default stride=1).
    # TODO(synk): very large H*W would need row tiling with halos; whole-image
    #             blocks are used here (fits VMEM comfortably at CNN-block sizes).
    del conv_bias  # exactly cancelled by training-mode BN mean subtraction
    N, Cin, H, W = x_nchw.shape
    Cout, _, KH, KW = w_oihw.shape
    Hp, Wp = H + 2 * padding, W + 2 * padding
    Ho, Wo = Hp - KH + 1, Wp - KW + 1
    HW = Ho * Wo
    K = KH * KW * Cin
    Cout_p = ((Cout + _LANES - 1) // _LANES) * _LANES          # lane-dense channels
    in_itemsize = jnp.dtype(compute_dtype).itemsize
    # Intermediate conv output: fp32 for the exact path, compute dtype (bf16)
    # for the fast path -> halves the HBM round trip between the two passes.
    y_store_dtype = jnp.float32 if compute_dtype == jnp.float32 else compute_dtype
    y_itemsize = jnp.dtype(y_store_dtype).itemsize

    # --- layout glue (plain JAX): NCHW -> NHWC, halo pad, weight slab --------
    x_nhwc = jnp.transpose(x_nchw, (0, 2, 3, 1))
    x_pad = jnp.pad(x_nhwc, ((0, 0), (padding, padding),
                             (padding, padding), (0, 0))).astype(compute_dtype)
    w_hwio = jnp.transpose(w_oihw, (2, 3, 1, 0))               # (KH,KW,Cin,Cout)
    w_slab = jnp.pad(w_hwio.reshape(K, Cout),
                     ((0, 0), (0, Cout_p - Cout))).astype(compute_dtype)

    # --- pass 1: conv + per-image partial BN statistics ----------------------
    kernel1 = functools.partial(_conv_stats_kernel, KH=KH, KW=KW)
    cost1 = pl.CostEstimate(
        flops=2 * N * HW * K * Cout_p,
        transcendentals=0,
        bytes_accessed=(N * Hp * Wp * Cin * in_itemsize
                        + K * Cout_p * in_itemsize
                        + N * HW * Cout_p * y_itemsize
                        + 2 * N * Cout_p * 4))
    y_conv, psum, psq = pl.pallas_call(
        kernel1,
        out_shape=(
            jax.ShapeDtypeStruct((N, HW, Cout_p), y_store_dtype),
            jax.ShapeDtypeStruct((N, 1, Cout_p), jnp.float32),
            jax.ShapeDtypeStruct((N, 1, Cout_p), jnp.float32),
        ),
        grid_spec=pltpu.PrefetchScalarGridSpec(
            num_scalar_prefetch=0,
            grid=(N,),
            in_specs=[
                pl.BlockSpec((1, Hp, Wp, Cin), lambda n: (n, 0, 0, 0)),
                pl.BlockSpec((K, Cout_p), lambda n: (0, 0)),  # resident weights
            ],
            out_specs=(
                pl.BlockSpec((1, HW, Cout_p), lambda n: (n, 0, 0)),
                pl.BlockSpec((1, 1, Cout_p), lambda n: (n, 0, 0)),
                pl.BlockSpec((1, 1, Cout_p), lambda n: (n, 0, 0)),
            )),
        compiler_params=pltpu.CompilerParams(
            dimension_semantics=("parallel",),
            vmem_limit_bytes=_VMEM_LIMIT),
        cost_estimate=cost1,
    )(x_pad, w_slab)

    # --- fold BN batch statistics into one scale/shift (tiny, plain JAX) -----
    count = jnp.float32(N * HW)
    mean = jnp.sum(psum[:, 0, :], axis=0) / count              # (Cout_p,)
    var = jnp.maximum(jnp.sum(psq[:, 0, :], axis=0) / count - mean * mean, 0.0)
    inv = lax.rsqrt(var + eps)
    gamma_p = jnp.pad(gamma.astype(jnp.float32), (0, Cout_p - Cout))
    beta_p = jnp.pad(beta.astype(jnp.float32), (0, Cout_p - Cout))
    scale = (inv * gamma_p).reshape(1, Cout_p)
    shift = (beta_p - mean * inv * gamma_p).reshape(1, Cout_p)

    # --- pass 2: normalize + ReLU sweep --------------------------------------
    cost2 = pl.CostEstimate(
        flops=2 * N * HW * Cout_p,
        transcendentals=0,
        bytes_accessed=(N * HW * Cout_p * (y_itemsize + 4) + 2 * Cout_p * 4))
    out2d = pl.pallas_call(
        _bn_relu_kernel,
        out_shape=jax.ShapeDtypeStruct((N, HW, Cout_p), jnp.float32),
        grid_spec=pltpu.PrefetchScalarGridSpec(
            num_scalar_prefetch=0,
            grid=(N,),
            in_specs=[
                pl.BlockSpec((1, HW, Cout_p), lambda n: (n, 0, 0)),
                pl.BlockSpec((1, Cout_p), lambda n: (0, 0)),
                pl.BlockSpec((1, Cout_p), lambda n: (0, 0)),
            ],
            out_specs=pl.BlockSpec((1, HW, Cout_p), lambda n: (n, 0, 0))),
        compiler_params=pltpu.CompilerParams(
            dimension_semantics=("parallel",),
            vmem_limit_bytes=_VMEM_LIMIT),
        cost_estimate=cost2,
    )(y_conv, scale, shift)

    # --- layout glue back to NCHW, drop channel padding -----------------------
    out = out2d[:, :, :Cout].reshape(N, Ho, Wo, Cout)
    return jnp.transpose(out, (0, 3, 1, 2))


def _reference(x_nchw, w_oihw, conv_bias, gamma, beta, eps=1e-5):
    """Pure-JAX reference (same semantics as the PyTorch module in train mode)."""
    y = lax.conv_general_dilated(
        x_nchw.astype(jnp.float32), w_oihw.astype(jnp.float32),
        window_strides=(1, 1), padding=((1, 1), (1, 1)),
        dimension_numbers=("NCHW", "OIHW", "NCHW"))
    y = y + conv_bias.reshape(1, -1, 1, 1)
    mean = jnp.mean(y, axis=(0, 2, 3), keepdims=True)
    var = jnp.mean((y - mean) ** 2, axis=(0, 2, 3), keepdims=True)
    y = (y - mean) * lax.rsqrt(var + eps)
    y = y * gamma.reshape(1, -1, 1, 1) + beta.reshape(1, -1, 1, 1)
    return jnp.maximum(y, 0.0)


if __name__ == "__main__":
    key = jax.random.PRNGKey(0)
    k_x, k_w, k_b, k_g, k_beta = jax.random.split(key, 5)

    N, Cin, H, W = 2, 4, 16, 16
    Cout, KH, KW = 8, 3, 3

    x = jax.random.normal(k_x, (N, Cin, H, W), jnp.float32)
    w = jax.random.normal(k_w, (Cout, Cin, KH, KW), jnp.float32) * 0.1
    conv_bias = jax.random.normal(k_b, (Cout,), jnp.float32) * 0.1
    gamma = 1.0 + 0.1 * jax.random.normal(k_g, (Cout,), jnp.float32)
    beta = 0.1 * jax.random.normal(k_beta, (Cout,), jnp.float32)

    ref = jax.block_until_ready(_reference(x, w, conv_bias, gamma, beta))

    # fp32 path (matches PyTorch fp32 semantics)
    out = jax.block_until_ready(conv_block(x, w, conv_bias, gamma, beta))
    assert out.shape == (N, Cout, H, W)
    assert jnp.allclose(out, ref, atol=1e-4, rtol=1e-4)

    # bf16-input MXU fast path (v6e/v7x); fp32 accumulation + BN fold -> loose tol
    out_bf16 = jax.block_until_ready(
        conv_block(x, w, conv_bias, gamma, beta, compute_dtype=jnp.bfloat16))
    assert out_bf16.shape == (N, Cout, H, W)
    assert jnp.allclose(out_bf16, ref, atol=1e-1, rtol=1e-1)

    print("KERNEL_OK")
</pallas_src>

<mosaic_0001>
module attributes {stable_mosaic.version = 11 : i64} {
  func.func @_conv_stats_kernel(%arg0: i32, %arg1: memref<1x18x18x4xf32, #tpu.memory_space<vmem>>, %arg2: memref<36x128xf32, #tpu.memory_space<vmem>>, %arg3: memref<1x256x128xf32, #tpu.memory_space<vmem>>, %arg4: memref<1x1x128xf32, #tpu.memory_space<vmem>>, %arg5: memref<1x1x128xf32, #tpu.memory_space<vmem>>) attributes {dimension_semantics = [#tpu.dimension_semantics<parallel>], iteration_bounds = array<i64: 2>, scalar_prefetch = 0 : i64, scratch_operands = 0 : i64, tpu.core_type = #tpu.core_type<tc>, window_params = [{transform_indices = @transform_0, window_bounds = array<i64: 1, 18, 18, 4>}, {pipeline_mode = #tpu.pipeline_mode<synchronous>, transform_indices = @transform_1, window_bounds = array<i64: 36, 128>}, {transform_indices = @transform_2, window_bounds = array<i64: 1, 256, 128>}, {transform_indices = @transform_3, window_bounds = array<i64: 1, 1, 128>}, {transform_indices = @transform_4, window_bounds = array<i64: 1, 1, 128>}]} {
    %c0 = arith.constant 0 : index
    %c0_0 = arith.constant 0 : index
    %c0_1 = arith.constant 0 : index
    %c0_2 = arith.constant 0 : index
    %0 = vector.load %arg1[%c0, %c0_0, %c0_1, %c0_2] : memref<1x18x18x4xf32, #tpu.memory_space<vmem>>, vector<1x18x18x4xf32>
    %1 = vector.shape_cast %0 : vector<1x18x18x4xf32> to vector<18x18x4xf32>
    %2 = vector.extract_strided_slice %1 {offsets = [0, 0, 0], sizes = [16, 16, 4], strides = [1, 1, 1]} : vector<18x18x4xf32> to vector<16x16x4xf32>
    %3 = vector.extract_strided_slice %1 {offsets = [0, 1, 0], sizes = [16, 16, 4], strides = [1, 1, 1]} : vector<18x18x4xf32> to vector<16x16x4xf32>
    %4 = vector.extract_strided_slice %1 {offsets = [0, 2, 0], sizes = [16, 16, 4], strides = [1, 1, 1]} : vector<18x18x4xf32> to vector<16x16x4xf32>
    %5 = vector.extract_strided_slice %1 {offsets = [1, 0, 0], sizes = [16, 16, 4], strides = [1, 1, 1]} : vector<18x18x4xf32> to vector<16x16x4xf32>
    %6 = vector.extract_strided_slice %1 {offsets = [1, 1, 0], sizes = [16, 16, 4], strides = [1, 1, 1]} : vector<18x18x4xf32> to vector<16x16x4xf32>
    %7 = vector.extract_strided_slice %1 {offsets = [1, 2, 0], sizes = [16, 16, 4], strides = [1, 1, 1]} : vector<18x18x4xf32> to vector<16x16x4xf32>
    %8 = vector.extract_strided_slice %1 {offsets = [2, 0, 0], sizes = [16, 16, 4], strides = [1, 1, 1]} : vector<18x18x4xf32> to vector<16x16x4xf32>
    %9 = vector.extract_strided_slice %1 {offsets = [2, 1, 0], sizes = [16, 16, 4], strides = [1, 1, 1]} : vector<18x18x4xf32> to vector<16x16x4xf32>
    %10 = vector.extract_strided_slice %1 {offsets = [2, 2, 0], sizes = [16, 16, 4], strides = [1, 1, 1]} : vector<18x18x4xf32> to vector<16x16x4xf32>
    %11 = tpu.concatenate %2, %3, %4, %5, %6, %7, %8, %9, %10 in 2 : vector<16x16x4xf32>, vector<16x16x4xf32>, vector<16x16x4xf32>, vector<16x16x4xf32>, vector<16x16x4xf32>, vector<16x16x4xf32>, vector<16x16x4xf32>, vector<16x16x4xf32>, vector<16x16x4xf32> -> vector<16x16x36xf32>
    %12 = vector.shape_cast %11 : vector<16x16x36xf32> to vector<256x36xf32>
    %c0_3 = arith.constant 0 : index
    %c0_4 = arith.constant 0 : index
    %13 = vector.load %arg2[%c0_3, %c0_4] : memref<36x128xf32, #tpu.memory_space<vmem>>, vector<36x128xf32>
    %cst = arith.constant dense<0.000000e+00> : vector<256x128xf32>
    %14 = tpu.matmul %12, %13, %cst {dimension_numbers = #tpu.dot_dimension_numbers<[1], [0], [0], [1], [0, 0, 1, 1], [], []>} : vector<256x36xf32>, vector<36x128xf32>, vector<256x128xf32> -> vector<256x128xf32>
    %c0_5 = arith.constant 0 : index
    %c0_6 = arith.constant 0 : index
    %c0_7 = arith.constant 0 : index
    %15 = vector.load %arg3[%c0_5, %c0_6, %c0_7] : memref<1x256x128xf32, #tpu.memory_space<vmem>>, vector<1x256x128xf32>
    %16 = vector.shape_cast %15 : vector<1x256x128xf32> to vector<256x128xf32>
    %17 = vector.shape_cast %14 : vector<256x128xf32> to vector<1x256x128xf32>
    tpu.vector_store %arg3[%c0_5, %c0_6, %c0_7], %17 {strides = array<i32>} : memref<1x256x128xf32, #tpu.memory_space<vmem>>, vector<1x256x128xf32>,
    %cst_8 = arith.constant dense<0.000000e+00> : vector<128xf32>
    %18 = vector.multi_reduction <add>, %14, %cst_8 [0] : vector<256x128xf32> to vector<128xf32>
    %19 = vector.shape_cast %18 : vector<128xf32> to vector<1x128xf32>
    %c0_9 = arith.constant 0 : index
    %c0_10 = arith.constant 0 : index
    %c0_11 = arith.constant 0 : index
    %20 = vector.load %arg4[%c0_9, %c0_10, %c0_11] : memref<1x1x128xf32, #tpu.memory_space<vmem>>, vector<1x1x128xf32>
    %21 = vector.shape_cast %20 : vector<1x1x128xf32> to vector<1x128xf32>
    %22 = vector.shape_cast %19 : vector<1x128xf32> to vector<1x1x128xf32>
    tpu.vector_store %arg4[%c0_9, %c0_10, %c0_11], %22 {strides = array<i32>} : memref<1x1x128xf32, #tpu.memory_space<vmem>>, vector<1x1x128xf32>,
    %23 = arith.mulf %14, %14 : vector<256x128xf32>
    %cst_12 = arith.constant dense<0.000000e+00> : vector<128xf32>
    %24 = vector.multi_reduction <add>, %23, %cst_12 [0] : vector<256x128xf32> to vector<128xf32>
    %25 = vector.shape_cast %24 : vector<128xf32> to vector<1x128xf32>
    %c0_13 = arith.constant 0 : index
    %c0_14 = arith.constant 0 : index
    %c0_15 = arith.constant 0 : index
    %26 = vector.load %arg5[%c0_13, %c0_14, %c0_15] : memref<1x1x128xf32, #tpu.memory_space<vmem>>, vector<1x1x128xf32>
    %27 = vector.shape_cast %26 : vector<1x1x128xf32> to vector<1x128xf32>
    %28 = vector.shape_cast %25 : vector<1x128xf32> to vector<1x1x128xf32>
    tpu.vector_store %arg5[%c0_13, %c0_14, %c0_15], %28 {strides = array<i32>} : memref<1x1x128xf32, #tpu.memory_space<vmem>>, vector<1x1x128xf32>,
    return
  }
  func.func @transform_0(%arg0: i32) -> (i32, i32, i32, i32) {
    %c0_i32 = arith.constant 0 : i32
    %c0_i32_0 = arith.constant 0 : i32
    %c0_i32_1 = arith.constant 0 : i32
    %c0_i32_2 = arith.constant 0 : i32
    return %arg0, %c0_i32, %c0_i32_0, %c0_i32_1 : i32, i32, i32, i32
  }
  func.func @transform_1(%arg0: i32) -> (i32, i32) {
    %c0_i32 = arith.constant 0 : i32
    %c0_i32_0 = arith.constant 0 : i32
    %c0_i32_1 = arith.constant 0 : i32
    return %c0_i32, %c0_i32_0 : i32, i32
  }
  func.func @transform_2(%arg0: i32) -> (i32, i32, i32) {
    %c0_i32 = arith.constant 0 : i32
    %c0_i32_0 = arith.constant 0 : i32
    %c0_i32_1 = arith.constant 0 : i32
    return %arg0, %c0_i32, %c0_i32_0 : i32, i32, i32
  }
  func.func @transform_3(%arg0: i32) -> (i32, i32, i32) {
    %c0_i32 = arith.constant 0 : i32
    %c0_i32_0 = arith.constant 0 : i32
    %c0_i32_1 = arith.constant 0 : i32
    return %arg0, %c0_i32, %c0_i32_0 : i32, i32, i32
  }
  func.func @transform_4(%arg0: i32) -> (i32, i32, i32) {
    %c0_i32 = arith.constant 0 : i32
    %c0_i32_0 = arith.constant 0 : i32
    %c0_i32_1 = arith.constant 0 : i32
    return %arg0, %c0_i32, %c0_i32_0 : i32, i32, i32
  }
}

</mosaic_0001>

<bundles_post_ra>
// kernel: tpu_custom_call.1
= control target key start
LH: loop header
LB: loop body
LE: loop exit
PB: predicated region body
PF: predicated region fallthrough
CT: control target
= control target key end

     0   :  { %10 = vsyncpa [#allocation3], 0  ;;  %s4431_s0 = inlined_call_operand.vmem [shape: f32[2,18,18,4], index: 0, kind: input, shape index: {}]   ;;  %s4432_s1 = inlined_call_operand.vmem [shape: f32[36,128], index: 1, kind: input, shape index: {}]   ;;  %s4433_s2 = inlined_call_operand.hbm [shape: f32[2,256,128], index: 2, kind: output, shape index: {0}]   ;;  %s4434_s3 = inlined_call_operand.hbm [shape: f32[2,1,128], index: 3, kind: output, shape index: {1}]   ;;  %s4435_s4 = inlined_call_operand.hbm [shape: f32[2,1,128], index: 4, kind: output, shape index: {2}]  }
   0x1   :  { %12 = vsyncpa [#allocation3 + $0x1], 0 }
   0x2   :  { %13 = vsyncpa [#allocation5], 0 }
   0x3   :  { %15 = vsyncpa [#allocation5 + $0x1], 0  ;;  %s2368_s15 = smov 0   ;;  %s2370_s16 = smov 0  }
   0x4   :  { %s2372_s17 = smov 0   ;;  %s2374_s18 = smov 0  }
   0x5 LB: > { %s2389_s19 = sadd.s32 4294967295, %s2332_s18   ;;  %s2058_s20 = sadd.s32 4294967294, %s2332_s18   ;;  %s2332_s18 = sphi %s2374_s18, %s4845_s18   ;;  %s2328_s17 = sphi %s2372_s17, %s4844_s17   ;;  %s2324_s16 = sphi %s2370_s16, %s4843_s16   ;;  %s2320_s15 = sphi %s2368_s15, %s4842_s15  }
   0x6   : > { %s2393_s21 = sadd.s32 1, %s2332_s18   ;;  %s75_s22 = sadd.s32 1, %s2328_s17 }
   0x7   : > { %s72_s23 = ssub.s32 %s2332_s18, %s2393_s21  ;;  %p85_p0 = scmp.ne.s32.totalorder %s2328_s17, %s2324_s16 }
   0x8   : > { %p73_p1 = scmp.eq.s32.totalorder %s72_s23, 0  ;;  %p86_p2 = scmp.eq.s32.totalorder %s2389_s19, 1 }
   0x9   : > { %p91_p3 = scmp.ne.s32.totalorder %s2324_s16, %s2320_s15  ;;  %p92_p4 = scmp.eq.s32.totalorder %s2058_s20, 1 }
   0xa   : > { %s2406_s24 = scalar_select %p73_p1, %s2328_s17, %s75_s22  }
   0xb   : > { %p2408_p5 = por %p86_p2, %p85_p0  ;;  %p2412_p6 = por %p92_p4, %p91_p3 }
   0xc   : > { %p2061_p7 = scmp.ge.s32.totalorder %s2332_s18, 1  ;;  %p173_p8 = scmp.lt.s32.totalorder %s2332_s18, 3 }
   0xe   : > { %p174_p9 = pnand %p2061_p7, %p173_p8 }
  0x10   : > { %177 = sbr.rel (%p174_p9) target bundleno = 994 (0x3e2), region = 28 }
  0x15   : > { %p207_p10 = scmp.lt.s32.totalorder %s2389_s19, 1  ;;  %vm314_vm0 = vcmask 1046528   ;;  %s2334_s6 = smov 4   ;;  %vm491_vm1 = vcmask 1045504   ;;  %vm1270_vm2 = vcmask 31744   ;;  %vm1303_vm3 = vcmask 64512  }
  0x16   : > { %s2335_s7 = smov 8   ;;  %s2336_s8 = smov 12   ;;  %vm1336_vm4 = vcmask 97280   ;;  %vm1369_vm5 = vcmask 130048   ;;  %vm1402_vm6 = vcmask 162816   ;;  %vm1636_vm7 = vcmask 1043456  }
  0x17   : > { %s208_s27 = scalar_select %p207_p10, %s2389_s19, 1  ;;  %vm1435_vm8 = vcmask 195584   ;;  %vm1468_vm9 = vcmask 228352   ;;  %vm1501_vm10 = vcmask 261120   ;;  %vm1539_vm11 = vcmask 293888  }
  0x18   : > { %s2337_s9 = smov 16   ;;  %s2338_s10 = smov 20  }
  0x19   : > { %s2118_s28 = smul.u32 432, %s208_s27  ;;  %s2339_s11 = smov 28  }
  0x1a   : > { %s2340_s12 = smov 24   ;;  %s2341_s13 = smov 32  }
  0x1b   : > { %s2423_s5 = scalar_lea.vmem %s4431_s0, %s2118_s28 }
  0x1c   : > { %v2426_v0 = vld [vmem:[%s2423_s5 + $0x30] sm:$0xff]  ;;  %v2429_v1 = vld [vmem:[%s2423_s5 + $0x38] sm:$0xff]  ;;  %v2437_v5 = vld [vmem:[%s2423_s5 + $0x20] sm:$0xff] }
  0x1d   : > { %v2432_v2 = vld [vmem:[%s2423_s5 + $0x18] sm:$0xff]  ;;  %v325_v3 = vrot.slane %v2426_v0, 1  ;;  %v326_v4 = vrot.slane %v2429_v1, 1  ;;  %v2441_v7 = vld [vmem:[%s2423_s5] sm:$0xff]  ;;  %v2444_v8 = vld [vmem:[%s2423_s5 + $0x8] sm:$0xff]  ;;  %v321_v9 = vrot.slane %v2437_v5, 1 }
  0x1e   : > { %v320_v6 = vrot.slane %v2432_v2, 1  ;;  %v315_v10 = vrot.slane %v2441_v7, 1  ;;  %v316_v11 = vrot.slane %v2444_v8, 1  ;;  %v2450_v12 = vld [vmem:[%s2423_s5 + $0x40] sm:$0x3]  ;;  %v2484_v25 = vld [vmem:[%s2423_s5 + $0x68] sm:$0xff] }
  0x1f   : > { %v2453_v13 = vsel %vm314_vm0, %v325_v3, %v326_v4  ;;  %v2456_v14 = vld [vmem:[%s2423_s5 + $0x28] sm:$0x3]  ;;  %v2459_v15 = vld [vmem:[%s2423_s5 + $0x10] sm:$0x3]  ;;  %v328_v18 = vrot.slane %v2450_v12, 1  ;;  %v2481_v24 = vld [vmem:[%s2423_s5 + $0x60] sm:$0xff] }
  0x20   : > { %403 = vrot.lane.b32.xlu2 %v2453_v13, %s2334_s6  ;;  %v2464_v16 = vsel %vm314_vm0, %v320_v6, %v321_v9  ;;  %v317_v17 = vsel %vm314_vm0, %v315_v10, %v316_v11  ;;  %v323_v19 = vrot.slane %v2456_v14, 1  ;;  %v318_v20 = vrot.slane %v2459_v15, 1  ;;  %v2487_v26 = vld [vmem:[%s2423_s5 + $0x50] sm:$0xff]  ;;  %v2490_v27 = vld [vmem:[%s2423_s5 + $0x58] sm:$0x3]  ;;  %v2493_v28 = vld [vmem:[%s2423_s5 + $0x48] sm:$0xff] }
  0x21   : > { %399 = vrot.lane.b32.xlu1 %v2464_v16, %s2334_s6  ;;  %395 = vrot.lane.b32.xlu0 %v317_v17, %s2334_s6  ;;  %v2474_v21 = vsel %vm314_vm0, %v326_v4, %v328_v18  ;;  %v335_v29 = vrot.slane %v2481_v24, 1  ;;  %v336_v30 = vrot.slane %v2484_v25, 1  ;;  %v331_v31 = vrot.slane %v2487_v26, 1  ;;  %v2515_v37 = vld [vmem:[%s2423_s5 + $0x80] sm:$0xff]  ;;  %v2518_v38 = vld [vmem:[%s2423_s5 + $0x88] sm:$0x3] }
  0x22   : > { %v2477_v22 = vsel %vm314_vm0, %v321_v9, %v323_v19  ;;  %v319_v23 = vsel %vm314_vm0, %v316_v11, %v318_v20  ;;  %v333_v32 = vrot.slane %v2490_v27, 1  ;;  %v330_v33 = vrot.slane %v2493_v28, 1  ;;  %v2521_v39 = vld [vmem:[%s2423_s5 + $0x78] sm:$0xff]  ;;  %v2524_v40 = vld [vmem:[%s2423_s5 + $0x70] sm:$0x3]  ;;  %v2546_v48 = vld [vmem:[%s2423_s5 + $0xa8] sm:$0xff] }
  0x23   : > { %v2506_v34 = vsel %vm314_vm0, %v335_v29, %v336_v30  ;;  %v341_v41 = vrot.slane %v2515_v37, 1  ;;  %v343_v42 = vrot.slane %v2518_v38, 1  ;;  %v340_v43 = vrot.slane %v2521_v39, 1  ;;  %v2549_v49 = vld [vmem:[%s2423_s5 + $0xb0] sm:$0xff]  ;;  %v2552_v50 = vld [vmem:[%s2423_s5 + $0x98] sm:$0xff]  ;;  %v2581_v61 = vld [vmem:[%s2423_s5 + $0xc8] sm:$0xff] }
  0x24   : > { %4525 = vst [vmem:[#allocation9_spill] sm:$0xff] %v2506_v34  ;;  %v2509_v35 = vsel %vm314_vm0, %v331_v31, %v333_v32  ;;  %v2512_v36 = vsel %vm314_vm0, %v330_v33, %v331_v31  ;;  %v338_v44 = vrot.slane %v2524_v40, 1  ;;  %v2555_v51 = vld [vmem:[%s2423_s5 + $0xa0] sm:$0x3]  ;;  %v2558_v52 = vld [vmem:[%s2423_s5 + $0x90] sm:$0xff]  ;;  %v350_v53 = vrot.slane %v2546_v48, 1 }
  0x25   : > { %v2537_v45 = vsel %vm314_vm0, %v341_v41, %v343_v42  ;;  %v2540_v46 = vsel %vm314_vm0, %v340_v43, %v341_v41  ;;  %v351_v54 = vrot.slane %v2549_v49, 1  ;;  %v346_v55 = vrot.slane %v2552_v50, 1  ;;  %v2584_v62 = vld [vmem:[%s2423_s5 + $0xd0] sm:$0x3]  ;;  %v2587_v63 = vld [vmem:[%s2423_s5 + $0xc0] sm:$0xff]  ;;  %v2615_v20 = vld [vmem:[%s2423_s5 + $0xf8] sm:$0xff] }
  0x26   : > { %4526 = vst [vmem:[#allocation10_spill] sm:$0xff] %v2537_v45  ;;  %v2543_v47 = vsel %vm314_vm0, %v336_v30, %v338_v44  ;;  %v348_v56 = vrot.slane %v2555_v51, 1  ;;  %v345_v57 = vrot.slane %v2558_v52, 1  ;;  %v2590_v3 = vld [vmem:[%s2423_s5 + $0xb8] sm:$0x3]  ;;  %v356_v4 = vrot.slane %v2581_v61, 1 }
  0x27   : > { %4527 = vst [vmem:[#allocation11_spill] sm:$0xff] %v2540_v46  ;;  %v2572_v58 = vsel %vm314_vm0, %v350_v53, %v351_v54  ;;  %v358_v6 = vrot.slane %v2584_v62, 1  ;;  %v355_v9 = vrot.slane %v2587_v63, 1  ;;  %v353_v10 = vrot.slane %v2590_v3, 1  ;;  %v2612_v19 = vld [vmem:[%s2423_s5 + $0xf0] sm:$0xff]  ;;  %v2624_v30 = vld [vmem:[%s2423_s5 + $0xd8] sm:$0xff] }
  0x28   : > { %405 = vrot.lane.b32.xlu2 %v2474_v21, %s2334_s6  ;;  %4528 = vst [vmem:[#allocation12_spill] sm:$0xff] %v2543_v47  ;;  %v2575_v59 = vsel %vm314_vm0, %v346_v55, %v348_v56  ;;  %v2578_v60 = vsel %vm314_vm0, %v345_v57, %v346_v55  ;;  %v2621_v29 = vld [vmem:[%s2423_s5 + $0xe8] sm:$0x3]  ;;  %v365_v31 = vrot.slane %v2612_v19, 1  ;;  %v366_v32 = vrot.slane %v2615_v20, 1 }
  0x29   : > { %401 = vrot.lane.b32.xlu1 %v2477_v22, %s2334_s6  ;;  %397 = vrot.lane.b32.xlu0 %v319_v23, %s2334_s6  ;;  %4529 = vst [vmem:[#allocation13_spill] sm:$0xff] %v2572_v58  ;;  %v2603_v11 = vsel %vm314_vm0, %v356_v4, %v358_v6  ;;  %v2606_v17 = vsel %vm314_vm0, %v355_v9, %v356_v4  ;;  %v2618_v23 = vld [vmem:[%s2423_s5 + $0xe0] sm:$0xff]  ;;  %v363_v41 = vrot.slane %v2621_v29, 1  ;;  %v360_v42 = vrot.slane %v2624_v30, 1  ;;  %v2650_v55 = vld [vmem:[%s2423_s5 + $0x118] sm:$0x3] }
  0x2a   : > { %4530 = vst [vmem:[#allocation14_spill] sm:$0xff] %v2575_v59  ;;  %v2609_v18 = vsel %vm314_vm0, %v351_v54, %v353_v10  ;;  %v361_v33 = vrot.slane %v2618_v23, 1  ;;  %v2638_v43 = vsel %vm314_vm0, %v365_v31, %v366_v32  ;;  %v2647_v54 = vld [vmem:[%s2423_s5 + $0x110] sm:$0xff]  ;;  %v2653_v56 = vld [vmem:[%s2423_s5 + $0x108] sm:$0xff]  ;;  %v2656_v57 = vld [vmem:[%s2423_s5 + $0x100] sm:$0x3] }
  0x2b   : > { %4531 = vst [vmem:[#allocation15_spill] sm:$0xff] %v2578_v60  ;;  %v371_v4 = vrot.slane %v2647_v54, 1  ;;  %v373_v6 = vrot.slane %v2650_v55, 1  ;;  %v370_v9 = vrot.slane %v2653_v56, 1  ;;  %v368_v10 = vrot.slane %v2656_v57, 1 }
  0x2c   : > { %4532 = vst [vmem:[#allocation16_spill] sm:$0xff] %v2603_v11  ;;  %v2641_v44 = vsel %vm314_vm0, %v361_v33, %v363_v41  ;;  %v2644_v53 = vsel %vm314_vm0, %v360_v42, %v361_v33  ;;  %v2678_v42 = vld [vmem:[%s2423_s5 + $0x138] sm:$0xff] }
  0x2d   : > { %4533 = vst [vmem:[#allocation17_spill] sm:$0xff] %v2606_v17  ;;  %v2669_v31 = vsel %vm314_vm0, %v371_v4, %v373_v6  ;;  %v2672_v33 = vsel %vm314_vm0, %v370_v9, %v371_v4  ;;  %v2675_v41 = vsel %vm314_vm0, %v366_v32, %v368_v10  ;;  %v2690_v6 = vld [vmem:[%s2423_s5 + $0x120] sm:$0xff]  ;;  %v380_v32 = vrot.slane %v2678_v42, 1 }
  0x2e   : > { %4534 = vst [vmem:[#allocation18_spill] sm:$0xff] %v2609_v18 }
  0x2f   : > { %4535 = vst [vmem:[#allocation19_spill] sm:$0xff] %v2638_v43 }
  0x30   : > { %411 = vrot.lane.b32.xlu2 %v2506_v34, %s2334_s6  ;;  %4536 = vst [vmem:[#allocation20_spill] sm:$0xff] %v2641_v44  ;;  %v2750_v34 = vld [vmem:[%s2423_s5 + $0x168] sm:$0xff] }
  0x31   : > { %409 = vrot.lane.b32.xlu1 %v2509_v35, %s2334_s6  ;;  %407 = vrot.lane.b32.xlu0 %v2512_v36, %s2334_s6  ;;  %4537 = vst [vmem:[#allocation21_spill] sm:$0xff] %v2644_v53 }
  0x32   : > { %4538 = vst [vmem:[#allocation22_spill] sm:$0xff] %v2669_v31 }
  0x33   : > { %4539 = vst [vmem:[#allocation23_spill] sm:$0xff] %v2672_v33 }
  0x34   : > { %4540 = vst [vmem:[#allocation24_spill] sm:$0xff] %v2675_v41 }
  0x35   : > { %4548 = vst [vmem:[#allocation32_spill] sm:$0xff] %v2750_v34 }
  0x38   : > { %417 = vrot.lane.b32.xlu2 %v2537_v45, %s2334_s6  ;;  %v2722_v45 = vld [vmem:[%s2423_s5 + $0x148] sm:$0x3] }
  0x39   : > { %415 = vrot.lane.b32.xlu1 %v2540_v46, %s2334_s6  ;;  %413 = vrot.lane.b32.xlu0 %v2543_v47, %s2334_s6 }
  0x40   : > { %423 = vrot.lane.b32.xlu2 %v2572_v58, %s2334_s6 }
  0x41   : > { %421 = vrot.lane.b32.xlu1 %v2575_v59, %s2334_s6  ;;  %419 = vrot.lane.b32.xlu0 %v2578_v60, %s2334_s6 }
  0x48   : > { %429 = vrot.lane.b32.xlu2 %v2603_v11, %s2334_s6  ;;  %v2684_v11 = vld [vmem:[%s2423_s5 + $0x128] sm:$0xff] }
  0x49   : > { %427 = vrot.lane.b32.xlu1 %v2606_v17, %s2334_s6  ;;  %425 = vrot.lane.b32.xlu0 %v2609_v18, %s2334_s6  ;;  %v376_v9 = vrot.slane %v2684_v11, 1  ;;  %v2716_v18 = vld [vmem:[%s2423_s5 + $0x160] sm:$0x3]  ;;  %v2719_v17 = vld [vmem:[%s2423_s5 + $0x150] sm:$0xff] }
  0x50   : > { %435 = vrot.lane.b32.xlu2 %v2638_v43, %s2334_s6  ;;  %v2681_v43 = vld [vmem:[%s2423_s5 + $0x140] sm:$0xff] }
  0x51   : > { %433 = vrot.lane.b32.xlu1 %v2641_v44, %s2334_s6  ;;  %431 = vrot.lane.b32.xlu0 %v2644_v53, %s2334_s6  ;;  %4541 = vst [vmem:[#allocation25_spill] sm:$0xff] %v2681_v43  ;;  %v2687_v53 = vld [vmem:[%s2423_s5 + $0x130] sm:$0x3]  ;;  %v381_v4 = vrot.slane %v2681_v43, 1  ;;  %v375_v44 = vrot.slane %v2690_v6, 1 }
  0x52   : > { %v378_v10 = vrot.slane %v2687_v53, 1 }
  0x53   : > { %v2704_v58 = vsel %vm314_vm0, %v380_v32, %v381_v4  ;;  %v388_v32 = vrot.slane %v2716_v18, 1 }
  0x54   : > { %4542 = vst [vmem:[#allocation26_spill] sm:$0xff] %v2704_v58 }
  0x58   : > { %441 = vrot.lane.b32.xlu2 %v2669_v31, %s2334_s6  ;;  %v2707_v31 = vsel %vm314_vm0, %v376_v9, %v378_v10  ;;  %v383_v10 = vrot.slane %v2722_v45, 1 }
  0x59   : > { %439 = vrot.lane.b32.xlu1 %v2672_v33, %s2334_s6  ;;  %437 = vrot.lane.b32.xlu0 %v2675_v41, %s2334_s6  ;;  %4543 = vst [vmem:[#allocation27_spill] sm:$0xff] %v2707_v31  ;;  %v2710_v33 = vsel %vm314_vm0, %v375_v44, %v376_v9  ;;  %v2713_v41 = vld [vmem:[%s2423_s5 + $0x158] sm:$0xff]  ;;  %v385_v9 = vrot.slane %v2719_v17, 1 }
  0x5a   : > { %4544 = vst [vmem:[#allocation28_spill] sm:$0xff] %v2710_v33  ;;  %v386_v44 = vrot.slane %v2713_v41, 1 }
  0x5c   : > { %v2735_v60 = vsel %vm314_vm0, %v386_v44, %v388_v32  ;;  %v2738_v59 = vsel %vm314_vm0, %v385_v9, %v386_v44  ;;  %v492_v44 = vrot.slane %v2441_v7, 2  ;;  %v498_v7 = vrot.slane %v2437_v5, 2 }
  0x5d   : > { %4545 = vst [vmem:[#allocation29_spill] sm:$0xff] %v2735_v60 }
  0x5e   : > { %4546 = vst [vmem:[#allocation30_spill] sm:$0xff] %v2738_v59 }
  0x60   : > { %447 = vrot.lane.b32.xlu2 %v2704_v58, %s2334_s6  ;;  %v2741_v58 = vsel %vm314_vm0, %v381_v4, %v383_v10  ;;  %v493_v4 = vrot.slane %v2444_v8, 2  ;;  %v390_v10 = vrot.slane %v2750_v34, 1  ;;  %v500_v8 = vrot.slane %v2456_v14, 2 }
  0x61   : > { %445 = vrot.lane.b32.xlu1 %v2707_v31, %s2334_s6  ;;  %443 = vrot.lane.b32.xlu0 %v2710_v33, %s2334_s6  ;;  %4547 = vst [vmem:[#allocation31_spill] sm:$0xff] %v2741_v58  ;;  %v2744_v31 = vld [vmem:[%s2423_s5 + $0x170] sm:$0xff]  ;;  %v2747_v33 = vld [vmem:[%s2423_s5 + $0x178] sm:$0x3]  ;;  %v507_v14 = vrot.slane %v2493_v28, 2 }
  0x62   : > { %v391_v32 = vrot.slane %v2744_v31, 1  ;;  %v393_v9 = vrot.slane %v2747_v33, 1  ;;  %v494_v47 = vsel %vm491_vm1, %v492_v44, %v493_v4  ;;  %v497_v44 = vrot.slane %v2432_v2, 2 }
  0x68   : > { %453 = vrot.lane.b32.xlu2 %v2735_v60, %s2334_s6  ;;  %v2765_v60 = vsel %vm314_vm0, %v391_v32, %v393_v9  ;;  %v495_v9 = vrot.slane %v2459_v15, 2  ;;  %v508_v15 = vrot.slane %v2487_v26, 2 }
  0x69   : > { %451 = vrot.lane.b32.xlu1 %v2738_v59, %s2334_s6  ;;  %449 = vrot.lane.b32.xlu0 %v2741_v58, %s2334_s6  ;;  %4549 = vst [vmem:[#allocation33_spill] sm:$0xff] %v2765_v60  ;;  %v2768_v59 = vsel %vm314_vm0, %v390_v10, %v391_v32  ;;  %v2780_v32 = vsel %vm491_vm1, %v498_v7, %v500_v8  ;;  %v503_v8 = vrot.slane %v2429_v1, 2 }
  0x6a   : > { %4550 = vst [vmem:[#allocation34_spill] sm:$0xff] %v2768_v59  ;;  %v2783_v10 = vsel %vm491_vm1, %v497_v44, %v498_v7  ;;  %v505_v7 = vrot.slane %v2450_v12, 2  ;;  %v2799_v44 = vsel %vm491_vm1, %v507_v14, %v508_v15  ;;  %v513_v12 = vrot.slane %v2484_v25, 2 }
  0x6b   : > { %4551 = vst [vmem:[#allocation35_spill] sm:$0xff] %v2780_v32  ;;  %v515_v14 = vrot.slane %v2524_v40, 2  ;;  %v523_v40 = vrot.slane %v2552_v50, 2 }
  0x6c   : > { %4553 = vst [vmem:[#allocation37_spill] sm:$0xff] %v2799_v44 }
  0x70   : > { %572 = vrot.lane.b32.xlu2 %v494_v47, %s2335_s7  ;;  %v496_v47 = vsel %vm491_vm1, %v493_v4, %v495_v9  ;;  %v502_v4 = vrot.slane %v2426_v0, 2  ;;  %v2802_v9 = vsel %vm491_vm1, %v503_v8, %v505_v7  ;;  %v512_v7 = vrot.slane %v2481_v24, 2 }
  0x71   : > { %457 = vrot.lane.b32.xlu1 %v2765_v60, %s2334_s6  ;;  %455 = vrot.lane.b32.xlu0 %v2768_v59, %s2334_s6 }
  0x78   : > { %578 = vrot.lane.b32.xlu2 %v2780_v32, %s2335_s7 }
  0x79   : > { %576 = vrot.lane.b32.xlu1 %v2783_v10, %s2335_s7  ;;  %574 = vrot.lane.b32.xlu0 %v496_v47, %s2335_s7  ;;  %v2805_v47 = vsel %vm491_vm1, %v502_v4, %v503_v8  ;;  %v510_v8 = vrot.slane %v2490_v27, 2  ;;  %v2820_v4 = vsel %vm491_vm1, %v513_v12, %v515_v14  ;;  %v522_v27 = vrot.slane %v2558_v52, 2 }
  0x7a   : > { %v2793_v59 = vpop.permute.xlu2 %403  ;;  %4555 = vst [vmem:[#allocation39_spill] sm:$0xff] %v2820_v4 }
  0x7b   : > { %4552 = vst [vmem:[#allocation36_spill] sm:$0xff] %v2793_v59  ;;  %v2826_v32 = vsel %vm491_vm1, %v508_v15, %v510_v8  ;;  %v520_v15 = vrot.slane %v2518_v38, 2  ;;  %v2842_v8 = vsel %vm491_vm1, %v522_v27, %v523_v40  ;;  %v528_v38 = vrot.slane %v2549_v49, 2 }
  0x7c   : > { %4557 = vst [vmem:[#allocation41_spill] sm:$0xff] %v2826_v32  ;;  %v530_v27 = vrot.slane %v2590_v3, 2  ;;  %v538_v3 = vrot.slane %v2618_v23, 2 }
  0x7d   : > { %4559 = vst [vmem:[#allocation43_spill] sm:$0xff] %v2842_v8 }
  0x80   : > { %584 = vrot.lane.b32.xlu2 %v2799_v44, %s2335_s7  ;;  %v2823_v44 = vsel %vm491_vm1, %v512_v7, %v513_v12  ;;  %v518_v12 = vrot.slane %v2515_v37, 2  ;;  %v517_v7 = vrot.slane %v2521_v39, 2 }
  0x81   : > { %582 = vrot.lane.b32.xlu1 %v2802_v9, %s2335_s7  ;;  %580 = vrot.lane.b32.xlu0 %v2805_v47, %s2335_s7  ;;  %4556 = vst [vmem:[#allocation40_spill] sm:$0xff] %v2823_v44 }
  0x82   : > { %v2815_v59 = vpop.permute.xlu2 %405 }
  0x83   : > { %4554 = vst [vmem:[#allocation38_spill] sm:$0xff] %v2815_v59  ;;  %v2845_v59 = vsel %vm491_vm1, %v518_v12, %v520_v15  ;;  %v527_v15 = vrot.slane %v2546_v48, 2 }
  0x84   : > { %4560 = vst [vmem:[#allocation44_spill] sm:$0xff] %v2845_v59 }
  0x88   : > { %590 = vrot.lane.b32.xlu2 %v2820_v4, %s2335_s7  ;;  %v2848_v4 = vsel %vm491_vm1, %v517_v7, %v518_v12  ;;  %v525_v12 = vrot.slane %v2555_v51, 2  ;;  %v537_v51 = vrot.slane %v2624_v30, 2 }
  0x89   : > { %588 = vrot.lane.b32.xlu1 %v2823_v44, %s2335_s7  ;;  %586 = vrot.lane.b32.xlu0 %v2826_v32, %s2335_s7  ;;  %4561 = vst [vmem:[#allocation45_spill] sm:$0xff] %v2848_v4 }
  0x8a   : > { %v2836_v14 = vpop.permute.xlu2 %411 }
  0x8b   : > { %4558 = vst [vmem:[#allocation42_spill] sm:$0xff] %v2836_v14 }
  0x90   : > { %596 = vrot.lane.b32.xlu2 %v2842_v8, %s2335_s7  ;;  %v2867_v8 = vsel %vm491_vm1, %v528_v38, %v530_v27 }
  0x91   : > { %594 = vrot.lane.b32.xlu1 %v2845_v59, %s2335_s7  ;;  %592 = vrot.lane.b32.xlu0 %v2848_v4, %s2335_s7  ;;  %4565 = vst [vmem:[#allocation49_spill] sm:$0xff] %v2867_v8  ;;  %v2870_v59 = vsel %vm491_vm1, %v527_v15, %v528_v38  ;;  %v2873_v4 = vsel %vm491_vm1, %v523_v40, %v525_v12  ;;  %v533_v38 = vrot.slane %v2581_v61, 2  ;;  %v535_v40 = vrot.slane %v2584_v62, 2 }
  0x92   : > { %v2858_v14 = vpop.permute.xlu2 %417  ;;  %4566 = vst [vmem:[#allocation50_spill] sm:$0xff] %v2870_v59  ;;  %v532_v15 = vrot.slane %v2587_v63, 2  ;;  %v543_v62 = vrot.slane %v2615_v20, 2 }
  0x93   : > { %4562 = vst [vmem:[#allocation46_spill] sm:$0xff] %v2858_v14  ;;  %v2862_v7 = vpop.permute.xlu1 %399  ;;  %v2864_v32 = vpop.permute.xlu0 %395 }
  0x94   : > { %4563 = vst [vmem:[#allocation47_spill] sm:$0xff] %v2862_v7  ;;  %v2893_v7 = vsel %vm491_vm1, %v537_v51, %v538_v3  ;;  %v545_v51 = vrot.slane %v2656_v57, 2  ;;  %v553_v57 = vrot.slane %v2684_v11, 2 }
  0x95   : > { %4564 = vst [vmem:[#allocation48_spill] sm:$0xff] %v2864_v32  ;;  %v2896_v32 = vsel %vm491_vm1, %v533_v38, %v535_v40  ;;  %v542_v40 = vrot.slane %v2612_v19, 2 }
  0x96   : > { %4570 = vst [vmem:[#allocation54_spill] sm:$0xff] %v2893_v7 }
  0x97   : > { %4571 = vst [vmem:[#allocation55_spill] sm:$0xff] %v2896_v32 }
  0x98   : > { %602 = vrot.lane.b32.xlu2 %v2867_v8, %s2335_s7  ;;  %v2899_v8 = vsel %vm491_vm1, %v532_v15, %v533_v38  ;;  %v540_v38 = vrot.slane %v2621_v29, 2  ;;  %v552_v29 = vrot.slane %v2690_v6, 2 }
  0x99   : > { %600 = vrot.lane.b32.xlu1 %v2870_v59, %s2335_s7  ;;  %598 = vrot.lane.b32.xlu0 %v2873_v4, %s2335_s7  ;;  %4572 = vst [vmem:[#allocation56_spill] sm:$0xff] %v2899_v8 }
  0x9a   : > { %v2883_v27 = vpop.permute.xlu2 %423 }
  0x9b   : > { %4567 = vst [vmem:[#allocation51_spill] sm:$0xff] %v2883_v27  ;;  %v2888_v12 = vpop.permute.xlu1 %401  ;;  %v2890_v14 = vpop.permute.xlu0 %397  ;;  %v2918_v27 = vsel %vm491_vm1, %v543_v62, %v545_v51 }
  0x9c   : > { %4568 = vst [vmem:[#allocation52_spill] sm:$0xff] %v2888_v12 }
  0x9d   : > { %4569 = vst [vmem:[#allocation53_spill] sm:$0xff] %v2890_v14 }
  0x9e   : > { %4576 = vst [vmem:[#allocation60_spill] sm:$0xff] %v2918_v27 }
  0xa0   : > { %608 = vrot.lane.b32.xlu2 %v2893_v7, %s2335_s7  ;;  %v2921_v7 = vsel %vm491_vm1, %v542_v40, %v543_v62  ;;  %v548_v62 = vrot.slane %v2647_v54, 2  ;;  %v547_v40 = vrot.slane %v2653_v56, 2 }
  0xa1   : > { %606 = vrot.lane.b32.xlu1 %v2896_v32, %s2335_s7  ;;  %604 = vrot.lane.b32.xlu0 %v2899_v8, %s2335_s7  ;;  %v2924_v8 = vsel %vm491_vm1, %v538_v3, %v540_v38  ;;  %v550_v3 = vrot.slane %v2650_v55, 2  ;;  %v558_v55 = vrot.slane %v2681_v43, 2 }
  0xa2   : > { %v2909_v12 = vpop.permute.xlu2 %429  ;;  %4577 = vst [vmem:[#allocation61_spill] sm:$0xff] %v2924_v8 }
  0xa3   : > { %4573 = vst [vmem:[#allocation57_spill] sm:$0xff] %v2909_v12  ;;  %v2913_v15 = vpop.permute.xlu1 %409  ;;  %v2915_v14 = vpop.permute.xlu0 %407  ;;  %v2947_v12 = vsel %vm491_vm1, %v548_v62, %v550_v3  ;;  %v557_v3 = vrot.slane %v2678_v42, 2 }
  0xa4   : > { %4574 = vst [vmem:[#allocation58_spill] sm:$0xff] %v2913_v15 }
  0xa5   : > { %4575 = vst [vmem:[#allocation59_spill] sm:$0xff] %v2915_v14  ;;  %v2944_v14 = vsel %vm491_vm1, %v552_v29, %v553_v57  ;;  %v560_v29 = vrot.slane %v2722_v45, 2  ;;  %v567_v45 = vrot.slane %v2750_v34, 2 }
  0xa6   : > { %4581 = vst [vmem:[#allocation65_spill] sm:$0xff] %v2944_v14 }
  0xa7   : > { %4582 = vst [vmem:[#allocation66_spill] sm:$0xff] %v2947_v12 }
  0xa8   : > { %614 = vrot.lane.b32.xlu2 %v2918_v27, %s2335_s7  ;;  %v2950_v27 = vsel %vm491_vm1, %v547_v40, %v548_v62  ;;  %v555_v62 = vrot.slane %v2687_v53, 2  ;;  %v568_v53 = vrot.slane %v2744_v31, 2 }
  0xa9   : > { %612 = vrot.lane.b32.xlu1 %v2921_v7, %s2335_s7  ;;  %610 = vrot.lane.b32.xlu0 %v2924_v8, %s2335_s7  ;;  %4583 = vst [vmem:[#allocation67_spill] sm:$0xff] %v2950_v27 }
  0xaa   : > { %v2934_v51 = vpop.permute.xlu2 %435 }
  0xab   : > { %4578 = vst [vmem:[#allocation62_spill] sm:$0xff] %v2934_v51  ;;  %v2939_v38 = vpop.permute.xlu1 %415  ;;  %v2941_v15 = vpop.permute.xlu0 %413  ;;  %v2969_v51 = vsel %vm491_vm1, %v558_v55, %v560_v29 }
  0xac   : > { %4579 = vst [vmem:[#allocation63_spill] sm:$0xff] %v2939_v38 }
  0xad   : > { %4580 = vst [vmem:[#allocation64_spill] sm:$0xff] %v2941_v15 }
  0xae   : > { %4587 = vst [vmem:[#allocation71_spill] sm:$0xff] %v2969_v51 }
  0xb0   : > { %620 = vrot.lane.b32.xlu2 %v2944_v14, %s2335_s7  ;;  %v2972_v14 = vsel %vm491_vm1, %v557_v3, %v558_v55  ;;  %v563_v55 = vrot.slane %v2713_v41, 2  ;;  %v562_v3 = vrot.slane %v2719_v17, 2 }
  0xb1   : > { %618 = vrot.lane.b32.xlu1 %v2947_v12, %s2335_s7  ;;  %616 = vrot.lane.b32.xlu0 %v2950_v27, %s2335_s7  ;;  %4588 = vst [vmem:[#allocation72_spill] sm:$0xff] %v2972_v14  ;;  %v2975_v27 = vsel %vm491_vm1, %v553_v57, %v555_v62  ;;  %v565_v57 = vrot.slane %v2716_v18, 2 }
  0xb2   : > { %v2960_v38 = vpop.permute.xlu2 %441  ;;  %4589 = vst [vmem:[#allocation73_spill] sm:$0xff] %v2975_v27 }
  0xb3   : > { %4584 = vst [vmem:[#allocation68_spill] sm:$0xff] %v2960_v38  ;;  %v2964_v40 = vpop.permute.xlu1 %421  ;;  %v2966_v15 = vpop.permute.xlu0 %419  ;;  %v2995_v38 = vsel %vm491_vm1, %v567_v45, %v568_v53  ;;  %v570_v45 = vrot.slane %v2747_v33, 2 }
  0xb4   : > { %4585 = vst [vmem:[#allocation69_spill] sm:$0xff] %v2964_v40  ;;  %v2998_v40 = vsel %vm491_vm1, %v563_v55, %v565_v57 }
  0xb5   : > { %4586 = vst [vmem:[#allocation70_spill] sm:$0xff] %v2966_v15 }
  0xb6   : > { %4592 = vst [vmem:[#allocation76_spill] sm:$0xff] %v2998_v40 }
  0xb8   : > { %626 = vrot.lane.b32.xlu2 %v2969_v51, %s2335_s7  ;;  %v3001_v51 = vsel %vm491_vm1, %v562_v3, %v563_v55  ;;  %v3017_v55 = vsel %vm491_vm1, %v568_v53, %v570_v45 }
  0xb9   : > { %624 = vrot.lane.b32.xlu1 %v2972_v14, %s2335_s7  ;;  %622 = vrot.lane.b32.xlu0 %v2975_v27, %s2335_s7  ;;  %4595 = vst [vmem:[#allocation79_spill] sm:$0xff] %v3017_v55 }
  0xba   : > { %v2985_v29 = vpop.permute.xlu2 %447 }
  0xbb   : > { %4590 = vst [vmem:[#allocation74_spill] sm:$0xff] %v2985_v29  ;;  %v2990_v62 = vpop.permute.xlu1 %427  ;;  %v2992_v15 = vpop.permute.xlu0 %425 }
  0xbc   : > { %4591 = vst [vmem:[#allocation75_spill] sm:$0xff] %v2990_v62 }
  0xc0   : > { %632 = vrot.lane.b32.xlu2 %v2995_v38, %s2335_s7 }
  0xc1   : > { %630 = vrot.lane.b32.xlu1 %v2998_v40, %s2335_s7  ;;  %628 = vrot.lane.b32.xlu0 %v3001_v51, %s2335_s7 }
  0xc2   : > { %v3009_v18 = vpop.permute.xlu2 %453 }
  0xc3   : > { %4593 = vst [vmem:[#allocation77_spill] sm:$0xff] %v3009_v18  ;;  %v3012_v29 = vpop.permute.xlu1 %433  ;;  %v3014_v57 = vpop.permute.xlu0 %431 }
  0xc4   : > { %4594 = vst [vmem:[#allocation78_spill] sm:$0xff] %v3012_v29 }
  0xc8   : > { %672 = vrot.lane.b32.xlu2 %v2437_v5, %s2336_s8 }
  0xc9   : > { %670 = vrot.lane.b32.xlu1 %v2432_v2, %s2336_s8  ;;  %634 = vrot.lane.b32.xlu0 %v3017_v55, %s2335_s7 }
  0xca   : > { %v3025_v3 = vpop.permute.xlu2 %572 }
  0xcb   : > { %4596 = vst [vmem:[#allocation80_spill] sm:$0xff] %v3025_v3  ;;  %v3027_v33 = vpop.permute.xlu1 %439  ;;  %v3029_v18 = vpop.permute.xlu0 %437 }
  0xcc   : > { %4597 = vst [vmem:[#allocation81_spill] sm:$0xff] %v3027_v33 }
  0xd0   : > { %678 = vrot.lane.b32.xlu2 %v2493_v28, %s2336_s8 }
  0xd1   : > { %676 = vrot.lane.b32.xlu1 %v2429_v1, %s2336_s8  ;;  %674 = vrot.lane.b32.xlu0 %v2426_v0, %s2336_s8 }
  0xd2   : > { %v3037_v5 = vpop.permute.xlu2 %578 }
  0xd3   : > { %4598 = vst [vmem:[#allocation82_spill] sm:$0xff] %v3037_v5  ;;  %v3039_v2 = vpop.permute.xlu1 %445  ;;  %v3041_v53 = vpop.permute.xlu0 %443 }
  0xd4   : > { %4599 = vst [vmem:[#allocation83_spill] sm:$0xff] %v3039_v2 }
  0xd8   : > { %684 = vrot.lane.b32.xlu2 %v2484_v25, %s2336_s8 }
  0xd9   : > { %682 = vrot.lane.b32.xlu1 %v2481_v24, %s2336_s8  ;;  %680 = vrot.lane.b32.xlu0 %v2487_v26, %s2336_s8 }
  0xda   : > { %v3049_v45 = vpop.permute.xlu2 %584 }
  0xdb   : > { %4600 = vst [vmem:[#allocation84_spill] sm:$0xff] %v3049_v45  ;;  %v3051_v1 = vpop.permute.xlu1 %451  ;;  %v3053_v3 = vpop.permute.xlu0 %449 }
  0xdc   : > { %4601 = vst [vmem:[#allocation85_spill] sm:$0xff] %v3051_v1 }
  0xdd   : > { %4602 = vst [vmem:[#allocation86_spill] sm:$0xff] %v3053_v3 }
  0xe0   : > { %690 = vrot.lane.b32.xlu2 %v2558_v52, %s2336_s8 }
  0xe1   : > { %688 = vrot.lane.b32.xlu1 %v2515_v37, %s2336_s8  ;;  %686 = vrot.lane.b32.xlu0 %v2521_v39, %s2336_s8 }
  0xe2   : > { %v3061_v25 = vpop.permute.xlu2 %590 }
  0xe3   : > { %4603 = vst [vmem:[#allocation87_spill] sm:$0xff] %v3061_v25  ;;  %v3063_v24 = vpop.permute.xlu1 %457  ;;  %v3065_v5 = vpop.permute.xlu0 %455 }
  0xe4   : > { %4604 = vst [vmem:[#allocation88_spill] sm:$0xff] %v3063_v24 }
  0xe5   : > { %4605 = vst [vmem:[#allocation89_spill] sm:$0xff] %v3065_v5 }
  0xe8   : > { %696 = vrot.lane.b32.xlu2 %v2549_v49, %s2336_s8 }
  0xe9   : > { %694 = vrot.lane.b32.xlu1 %v2546_v48, %s2336_s8  ;;  %692 = vrot.lane.b32.xlu0 %v2552_v50, %s2336_s8 }
  0xea   : > { %v3073_v45 = vpop.permute.xlu2 %596 }
  0xeb   : > { %4606 = vst [vmem:[#allocation90_spill] sm:$0xff] %v3073_v45  ;;  %v3075_v37 = vpop.permute.xlu1 %576  ;;  %v3077_v39 = vpop.permute.xlu0 %574 }
  0xec   : > { %4607 = vst [vmem:[#allocation91_spill] sm:$0xff] %v3075_v37 }
  0xed   : > { %4608 = vst [vmem:[#allocation92_spill] sm:$0xff] %v3077_v39 }
  0xf0   : > { %702 = vrot.lane.b32.xlu2 %v2624_v30, %s2336_s8 }
  0xf1   : > { %700 = vrot.lane.b32.xlu1 %v2581_v61, %s2336_s8  ;;  %698 = vrot.lane.b32.xlu0 %v2587_v63, %s2336_s8 }
  0xf2   : > { %v3085_v25 = vpop.permute.xlu2 %602 }
  0xf3   : > { %v3087_v24 = vpop.permute.xlu1 %582  ;;  %v3089_v1 = vpop.permute.xlu0 %580 }
  0xf4   : > { %4609 = vst [vmem:[#allocation93_spill] sm:$0xff] %v3087_v24 }
  0xf5   : > { %4610 = vst [vmem:[#allocation94_spill] sm:$0xff] %v3089_v1 }
  0xf8   : > { %708 = vrot.lane.b32.xlu2 %v2615_v20, %s2336_s8 }
  0xf9   : > { %706 = vrot.lane.b32.xlu1 %v2612_v19, %s2336_s8  ;;  %704 = vrot.lane.b32.xlu0 %v2618_v23, %s2336_s8 }
  0xfa   : > { %v3097_v45 = vpop.permute.xlu2 %608 }
  0xfb   : > { %v3099_v61 = vpop.permute.xlu1 %588  ;;  %v3101_v63 = vpop.permute.xlu0 %586 }
  0xfc   : > { %4611 = vst [vmem:[#allocation95_spill] sm:$0xff] %v3099_v61  ;;  %v3143_v61 = vld [vmem:[%s2423_s5 + $0x180] sm:$0xff] }
  0xfd   : > { %4612 = vst [vmem:[#allocation96_spill] sm:$0xff] %v3101_v63 }
 0x100   : > { %714 = vrot.lane.b32.xlu2 %v2690_v6, %s2336_s8 }
 0x101   : > { %712 = vrot.lane.b32.xlu1 %v2647_v54, %s2336_s8  ;;  %710 = vrot.lane.b32.xlu0 %v2653_v56, %s2336_s8 }
 0x102   : > { %v3109_v24 = vpop.permute.xlu2 %614 }
 0x103   : > { %v3111_v23 = vpop.permute.xlu1 %594  ;;  %v3113_v1 = vpop.permute.xlu0 %592 }
 0x104   : > { %4613 = vst [vmem:[#allocation97_spill] sm:$0xff] %v3111_v23 }
 0x105   : > { %4614 = vst [vmem:[#allocation98_spill] sm:$0xff] %v3113_v1  ;;  %v3140_v1 = vld [vmem:[%s2423_s5 + $0x188] sm:$0xff] }
 0x108   : > { %720 = vrot.lane.b32.xlu2 %v2681_v43, %s2336_s8 }
 0x109   : > { %718 = vrot.lane.b32.xlu1 %v2678_v42, %s2336_s8  ;;  %716 = vrot.lane.b32.xlu0 %v2684_v11, %s2336_s8 }
 0x10a   : > { %v3121_v54 = vpop.permute.xlu2 %620 }
 0x10b   : > { %v3123_v56 = vpop.permute.xlu1 %600  ;;  %v3125_v63 = vpop.permute.xlu0 %598 }
 0x110   : > { %726 = vrot.lane.b32.xlu2 %v2750_v34, %s2336_s8 }
 0x111   : > { %724 = vrot.lane.b32.xlu1 %v2713_v41, %s2336_s8  ;;  %722 = vrot.lane.b32.xlu0 %v2719_v17, %s2336_s8 }
 0x112   : > { %v3133_v23 = vpop.permute.xlu2 %626 }
 0x113   : > { %4615 = vst [vmem:[#allocation99_spill] sm:$0xff] %v3133_v23  ;;  %v3135_v42 = vpop.permute.xlu1 %606  ;;  %v3137_v11 = vpop.permute.xlu0 %604 }
 0x114   : > { %4616 = vst [vmem:[#allocation100_spill] sm:$0xff] %v3135_v42 }
 0x115   : > { %4617 = vst [vmem:[#allocation101_spill] sm:$0xff] %v3137_v11  ;;  %v4649_v11 = vld [vmem:[#allocation23_spill] sm:$0xff] }
 0x118   : > { %732 = vrot.lane.b32.xlu2 %v3140_v1, %s2336_s8 }
 0x119   : > { %730 = vrot.lane.b32.xlu1 %v3143_v61, %s2336_s8  ;;  %728 = vrot.lane.b32.xlu0 %v2744_v31, %s2336_s8 }
 0x11a   : > { %v3151_v17 = vpop.permute.xlu2 %632 }
 0x11b   : > { %4618 = vst [vmem:[#allocation102_spill] sm:$0xff] %v3151_v17  ;;  %v3153_v41 = vpop.permute.xlu1 %612  ;;  %v3155_v37 = vpop.permute.xlu0 %610 }
 0x11c   : > { %4619 = vst [vmem:[#allocation103_spill] sm:$0xff] %v3153_v41 }
 0x11d   : > { %4620 = vst [vmem:[#allocation104_spill] sm:$0xff] %v3155_v37 }
 0x120   : > { %776 = vrot.lane.b32.xlu2 %v2453_v13, %s2337_s9 }
 0x121   : > { %774 = vrot.lane.b32.xlu1 %v2477_v22, %s2337_s9  ;;  %772 = vrot.lane.b32.xlu0 %v2464_v16, %s2337_s9 }
 0x122   : > { %v3163_v39 = vpop.permute.xlu2 %672 }
 0x123   : > { %4621 = vst [vmem:[#allocation105_spill] sm:$0xff] %v3163_v39  ;;  %v3165_v2 = vpop.permute.xlu1 %618  ;;  %v3167_v31 = vpop.permute.xlu0 %616  ;;  %v4627_v39 = vld [vmem:[#allocation12_spill] sm:$0xff] }
 0x124   : > { %4622 = vst [vmem:[#allocation106_spill] sm:$0xff] %v3165_v2 }
 0x125   : > { %4623 = vst [vmem:[#allocation107_spill] sm:$0xff] %v3167_v31  ;;  %v4628_v31 = vld [vmem:[#allocation9_spill] sm:$0xff] }
 0x128   : > { %782 = vrot.lane.b32.xlu2 %v2509_v35, %s2337_s9 }
 0x129   : > { %780 = vrot.lane.b32.xlu1 %v2512_v36, %s2337_s9  ;;  %778 = vrot.lane.b32.xlu0 %v2474_v21, %s2337_s9 }
 0x12a   : > { %v3175_v33 = vpop.permute.xlu2 %678 }
 0x12b   : > { %4624 = vst [vmem:[#allocation108_spill] sm:$0xff] %v3175_v33  ;;  %v3177_v22 = vpop.permute.xlu1 %624  ;;  %v3179_v16 = vpop.permute.xlu0 %622  ;;  %v4632_v33 = vld [vmem:[#allocation14_spill] sm:$0xff] }
 0x12c   : > { %4625 = vst [vmem:[#allocation109_spill] sm:$0xff] %v3177_v22 }
 0x12d   : > { %4626 = vst [vmem:[#allocation110_spill] sm:$0xff] %v3179_v16  ;;  %v4633_v16 = vld [vmem:[#allocation15_spill] sm:$0xff] }
 0x130   : > { %788 = vrot.lane.b32.xlu2 %v2540_v46, %s2337_s9  ;;  %v4634_v46 = vld [vmem:[#allocation10_spill] sm:$0xff] }
 0x131   : > { %786 = vrot.lane.b32.xlu1 %v4627_v39, %s2337_s9  ;;  %784 = vrot.lane.b32.xlu0 %v4628_v31, %s2337_s9 }
 0x132   : > { %v3187_v2 = vpop.permute.xlu2 %684 }
 0x133   : > { %4629 = vst [vmem:[#allocation9_spill] sm:$0xff] %v3187_v2  ;;  %v3189_v37 = vpop.permute.xlu1 %630  ;;  %v3191_v41 = vpop.permute.xlu0 %628  ;;  %v4638_v2 = vld [vmem:[#allocation17_spill] sm:$0xff] }
 0x134   : > { %4630 = vst [vmem:[#allocation111_spill] sm:$0xff] %v3189_v37  ;;  %v4640_v37 = vld [vmem:[#allocation13_spill] sm:$0xff] }
 0x135   : > { %4631 = vst [vmem:[#allocation112_spill] sm:$0xff] %v3191_v41  ;;  %v4639_v41 = vld [vmem:[#allocation18_spill] sm:$0xff] }
 0x138   : > { %794 = vrot.lane.b32.xlu2 %v4632_v33, %s2337_s9 }
 0x139   : > { %792 = vrot.lane.b32.xlu1 %v4633_v16, %s2337_s9  ;;  %790 = vrot.lane.b32.xlu0 %v4634_v46, %s2337_s9 }
 0x13a   : > { %v3199_v22 = vpop.permute.xlu2 %690 }
 0x13b   : > { %4635 = vst [vmem:[#allocation14_spill] sm:$0xff] %v3199_v22  ;;  %v3201_v39 = vpop.permute.xlu1 %670  ;;  %v3203_v17 = vpop.permute.xlu0 %634  ;;  %v4643_v22 = vld [vmem:[#allocation20_spill] sm:$0xff] }
 0x13c   : > { %4636 = vst [vmem:[#allocation15_spill] sm:$0xff] %v3201_v39  ;;  %v4644_v39 = vld [vmem:[#allocation21_spill] sm:$0xff] }
 0x13d   : > { %4637 = vst [vmem:[#allocation113_spill] sm:$0xff] %v3203_v17 }
 0x140   : > { %800 = vrot.lane.b32.xlu2 %v4638_v2, %s2337_s9  ;;  %v4645_v2 = vld [vmem:[#allocation16_spill] sm:$0xff] }
 0x141   : > { %798 = vrot.lane.b32.xlu1 %v4639_v41, %s2337_s9  ;;  %796 = vrot.lane.b32.xlu0 %v4640_v37, %s2337_s9 }
 0x142   : > { %v3211_v29 = vpop.permute.xlu2 %696 }
 0x143   : > { %v3213_v34 = vpop.permute.xlu1 %676  ;;  %v3215_v46 = vpop.permute.xlu0 %674 }
 0x144   : > { %4641 = vst [vmem:[#allocation13_spill] sm:$0xff] %v3213_v34  ;;  %v4650_v34 = vld [vmem:[#allocation24_spill] sm:$0xff] }
 0x145   : > { %4642 = vst [vmem:[#allocation114_spill] sm:$0xff] %v3215_v46 }
 0x148   : > { %806 = vrot.lane.b32.xlu2 %v4643_v22, %s2337_s9  ;;  %v4651_v22 = vld [vmem:[#allocation19_spill] sm:$0xff] }
 0x149   : > { %804 = vrot.lane.b32.xlu1 %v4644_v39, %s2337_s9  ;;  %802 = vrot.lane.b32.xlu0 %v4645_v2, %s2337_s9 }
 0x14a   : > { %v3223_v17 = vpop.permute.xlu2 %702 }
 0x14b   : > { %4646 = vst [vmem:[#allocation115_spill] sm:$0xff] %v3223_v17  ;;  %v3225_v41 = vpop.permute.xlu1 %682  ;;  %v3227_v5 = vpop.permute.xlu0 %680 }
 0x14c   : > { %4647 = vst [vmem:[#allocation116_spill] sm:$0xff] %v3225_v41  ;;  %v4655_v41 = vld [vmem:[#allocation27_spill] sm:$0xff] }
 0x14d   : > { %4648 = vst [vmem:[#allocation117_spill] sm:$0xff] %v3227_v5  ;;  %v4656_v5 = vld [vmem:[#allocation28_spill] sm:$0xff] }
 0x150   : > { %812 = vrot.lane.b32.xlu2 %v4649_v11, %s2337_s9  ;;  %v4657_v11 = vld [vmem:[#allocation22_spill] sm:$0xff] }
 0x151   : > { %810 = vrot.lane.b32.xlu1 %v4650_v34, %s2337_s9  ;;  %808 = vrot.lane.b32.xlu0 %v4651_v22, %s2337_s9 }
 0x152   : > { %v3235_v39 = vpop.permute.xlu2 %708 }
 0x153   : > { %4652 = vst [vmem:[#allocation19_spill] sm:$0xff] %v3235_v39  ;;  %v3237_v46 = vpop.permute.xlu1 %688  ;;  %v3239_v2 = vpop.permute.xlu0 %686  ;;  %v4661_v39 = vld [vmem:[#allocation30_spill] sm:$0xff] }
 0x154   : > { %4653 = vst [vmem:[#allocation118_spill] sm:$0xff] %v3237_v46 }
 0x155   : > { %4654 = vst [vmem:[#allocation119_spill] sm:$0xff] %v3239_v2 }
 0x158   : > { %818 = vrot.lane.b32.xlu2 %v4655_v41, %s2337_s9  ;;  %v4662_v41 = vld [vmem:[#allocation26_spill] sm:$0xff] }
 0x159   : > { %816 = vrot.lane.b32.xlu1 %v4656_v5, %s2337_s9  ;;  %814 = vrot.lane.b32.xlu0 %v4657_v11, %s2337_s9  ;;  %v3266_v11 = vld [vmem:[%s2423_s5 + $0x190] sm:$0x3] }
 0x15a   : > { %v3247_v17 = vpop.permute.xlu2 %714 }
 0x15b   : > { %4658 = vst [vmem:[#allocation120_spill] sm:$0xff] %v3247_v17  ;;  %v3249_v42 = vpop.permute.xlu1 %694  ;;  %v3251_v34 = vpop.permute.xlu0 %692 }
 0x15c   : > { %4659 = vst [vmem:[#allocation121_spill] sm:$0xff] %v3249_v42  ;;  %v4664_v42 = vld [vmem:[#allocation34_spill] sm:$0xff] }
 0x15d   : > { %4660 = vst [vmem:[#allocation122_spill] sm:$0xff] %v3251_v34  ;;  %v4665_v34 = vld [vmem:[#allocation29_spill] sm:$0xff] }
 0x160   : > { %824 = vrot.lane.b32.xlu2 %v4661_v39, %s2337_s9  ;;  %v770_v39 = vrot.slane %v3266_v11, 1 }
 0x161   : > { %822 = vrot.lane.b32.xlu1 %v2741_v58, %s2337_s9  ;;  %820 = vrot.lane.b32.xlu0 %v4662_v41, %s2337_s9  ;;  %v768_v41 = vrot.slane %v3140_v1, 1 }
 0x162   : > { %v3259_v46 = vpop.permute.xlu2 %720 }
 0x163   : > { %4663 = vst [vmem:[#allocation123_spill] sm:$0xff] %v3259_v46  ;;  %v3261_v5 = vpop.permute.xlu1 %700  ;;  %v3263_v2 = vpop.permute.xlu0 %698  ;;  %v767_v46 = vrot.slane %v3143_v61, 1 }
 0x168   : > { %830 = vrot.lane.b32.xlu2 %v2765_v60, %s2337_s9  ;;  %v3284_v60 = vsel %vm314_vm0, %v768_v41, %v770_v39 }
 0x169   : > { %828 = vrot.lane.b32.xlu1 %v4664_v42, %s2337_s9  ;;  %826 = vrot.lane.b32.xlu0 %v4665_v34, %s2337_s9  ;;  %4668 = vst [vmem:[#allocation126_spill] sm:$0xff] %v3284_v60  ;;  %v3287_v42 = vsel %vm314_vm0, %v767_v46, %v768_v41  ;;  %v4672_v46 = vld [vmem:[#allocation35_spill] sm:$0xff] }
 0x16a   : > { %v3274_v58 = vpop.permute.xlu2 %726  ;;  %4669 = vst [vmem:[#allocation127_spill] sm:$0xff] %v3287_v42 }
 0x16b   : > { %4666 = vst [vmem:[#allocation124_spill] sm:$0xff] %v3274_v58  ;;  %v3279_v17 = vpop.permute.xlu1 %706  ;;  %v3281_v23 = vpop.permute.xlu0 %704 }
 0x16c   : > { %4667 = vst [vmem:[#allocation125_spill] sm:$0xff] %v3281_v23 }
 0x170   : > { %873 = vrot.lane.b32.xlu2 %v2783_v10, %s2338_s10 }
 0x171   : > { %834 = vrot.lane.b32.xlu1 %v3284_v60, %s2337_s9  ;;  %832 = vrot.lane.b32.xlu0 %v3287_v42, %s2337_s9  ;;  %v4675_v60 = vld [vmem:[#allocation41_spill] sm:$0xff]  ;;  %s2230_s9 = scalar_lea.hbm %s4433_s2, 512 }
 0x172   : > { %v3295_v34 = vpop.permute.xlu2 %732  ;;  %v4676_v42 = vld [vmem:[#allocation37_spill] sm:$0xff] }
 0x173   : > { %4670 = vst [vmem:[#allocation128_spill] sm:$0xff] %v3295_v34  ;;  %v3297_v58 = vpop.permute.xlu1 %712  ;;  %v3299_v23 = vpop.permute.xlu0 %710 }
 0x174   : > { %4671 = vst [vmem:[#allocation129_spill] sm:$0xff] %v3299_v23 }
 0x178   : > { %879 = vrot.lane.b32.xlu2 %v2802_v9, %s2338_s10 }
 0x179   : > { %877 = vrot.lane.b32.xlu1 %v2805_v47, %s2338_s10  ;;  %875 = vrot.lane.b32.xlu0 %v4672_v46, %s2338_s10 }
 0x17a   : > { %v3307_v10 = vpop.permute.xlu2 %776 }
 0x17b   : > { %4673 = vst [vmem:[#allocation35_spill] sm:$0xff] %v3307_v10  ;;  %v3309_v39 = vpop.permute.xlu1 %718  ;;  %v3311_v41 = vpop.permute.xlu0 %716  ;;  %v4679_v10 = vld [vmem:[#allocation44_spill] sm:$0xff] }
 0x17c   : > { %4674 = vst [vmem:[#allocation130_spill] sm:$0xff] %v3311_v41  ;;  %v4680_v41 = vld [vmem:[#allocation45_spill] sm:$0xff] }
 0x180   : > { %885 = vrot.lane.b32.xlu2 %v2823_v44, %s2338_s10  ;;  %v4681_v44 = vld [vmem:[#allocation39_spill] sm:$0xff] }
 0x181   : > { %883 = vrot.lane.b32.xlu1 %v4675_v60, %s2338_s10  ;;  %881 = vrot.lane.b32.xlu0 %v4676_v42, %s2338_s10 }
 0x182   : > { %v3319_v34 = vpop.permute.xlu2 %782 }
 0x183   : > { %4677 = vst [vmem:[#allocation41_spill] sm:$0xff] %v3319_v34  ;;  %v3321_v23 = vpop.permute.xlu1 %724  ;;  %v3323_v46 = vpop.permute.xlu0 %722  ;;  %v4685_v34 = vld [vmem:[#allocation43_spill] sm:$0xff] }
 0x184   : > { %4678 = vst [vmem:[#allocation37_spill] sm:$0xff] %v3323_v46 }
 0x188   : > { %891 = vrot.lane.b32.xlu2 %v4679_v10, %s2338_s10 }
 0x189   : > { %889 = vrot.lane.b32.xlu1 %v4680_v41, %s2338_s10  ;;  %887 = vrot.lane.b32.xlu0 %v4681_v44, %s2338_s10 }
 0x18a   : > { %v3331_v62 = vpop.permute.xlu2 %788 }
 0x18b   : > { %4682 = vst [vmem:[#allocation131_spill] sm:$0xff] %v3331_v62  ;;  %v3333_v43 = vpop.permute.xlu1 %730  ;;  %v3335_v3 = vpop.permute.xlu0 %728  ;;  %v4689_v62 = vld [vmem:[#allocation56_spill] sm:$0xff] }
 0x18c   : > { %4683 = vst [vmem:[#allocation132_spill] sm:$0xff] %v3333_v43 }
 0x18d   : > { %4684 = vst [vmem:[#allocation133_spill] sm:$0xff] %v3335_v3  ;;  %v4690_v3 = vld [vmem:[#allocation49_spill] sm:$0xff] }
 0x190   : > { %897 = vrot.lane.b32.xlu2 %v2870_v59, %s2338_s10 }
 0x191   : > { %895 = vrot.lane.b32.xlu1 %v2873_v4, %s2338_s10  ;;  %893 = vrot.lane.b32.xlu0 %v4685_v34, %s2338_s10 }
 0x192   : > { %v3343_v10 = vpop.permute.xlu2 %794 }
 0x193   : > { %4686 = vst [vmem:[#allocation43_spill] sm:$0xff] %v3343_v10  ;;  %v3345_v41 = vpop.permute.xlu1 %774  ;;  %v3347_v46 = vpop.permute.xlu0 %772  ;;  %v4693_v10 = vld [vmem:[#allocation54_spill] sm:$0xff] }
 0x194   : > { %4687 = vst [vmem:[#allocation134_spill] sm:$0xff] %v3345_v41 }
 0x195   : > { %4688 = vst [vmem:[#allocation135_spill] sm:$0xff] %v3347_v46 }
 0x198   : > { %903 = vrot.lane.b32.xlu2 %v2896_v32, %s2338_s10 }
 0x199   : > { %901 = vrot.lane.b32.xlu1 %v4689_v62, %s2338_s10  ;;  %899 = vrot.lane.b32.xlu0 %v4690_v3, %s2338_s10 }
 0x19a   : > { %v3355_v44 = vpop.permute.xlu2 %800 }
 0x19b   : > { %v3357_v43 = vpop.permute.xlu1 %780  ;;  %v3359_v59 = vpop.permute.xlu0 %778 }
 0x19c   : > { %4691 = vst [vmem:[#allocation136_spill] sm:$0xff] %v3357_v43  ;;  %v4696_v43 = vld [vmem:[#allocation67_spill] sm:$0xff] }
 0x19d   : > { %4692 = vst [vmem:[#allocation137_spill] sm:$0xff] %v3359_v59  ;;  %v4697_v59 = vld [vmem:[#allocation60_spill] sm:$0xff] }
 0x1a0   : > { %909 = vrot.lane.b32.xlu2 %v2921_v7, %s2338_s10 }
 0x1a1   : > { %907 = vrot.lane.b32.xlu1 %v2924_v8, %s2338_s10  ;;  %905 = vrot.lane.b32.xlu0 %v4693_v10, %s2338_s10 }
 0x1a2   : > { %v3367_v32 = vpop.permute.xlu2 %806 }
 0x1a3   : > { %v3369_v62 = vpop.permute.xlu1 %786  ;;  %v3371_v41 = vpop.permute.xlu0 %784 }
 0x1a4   : > { %4694 = vst [vmem:[#allocation138_spill] sm:$0xff] %v3369_v62  ;;  %v4700_v62 = vld [vmem:[#allocation65_spill] sm:$0xff] }
 0x1a5   : > { %4695 = vst [vmem:[#allocation139_spill] sm:$0xff] %v3371_v41 }
 0x1a8   : > { %915 = vrot.lane.b32.xlu2 %v2947_v12, %s2338_s10 }
 0x1a9   : > { %913 = vrot.lane.b32.xlu1 %v4696_v43, %s2338_s10  ;;  %911 = vrot.lane.b32.xlu0 %v4697_v59, %s2338_s10 }
 0x1aa   : > { %v3379_v46 = vpop.permute.xlu2 %812 }
 0x1ab   : > { %v3381_v8 = vpop.permute.xlu1 %792  ;;  %v3383_v10 = vpop.permute.xlu0 %790 }
 0x1ac   : > { %4698 = vst [vmem:[#allocation60_spill] sm:$0xff] %v3381_v8  ;;  %v868_v8 = vrot.slane %v3143_v61, 2  ;;  %v871_v61 = vrot.slane %v3266_v11, 2 }
 0x1ad   : > { %4699 = vst [vmem:[#allocation140_spill] sm:$0xff] %v3383_v10  ;;  %v869_v10 = vrot.slane %v3140_v1, 2 }
 0x1b0   : > { %921 = vrot.lane.b32.xlu2 %v2972_v14, %s2338_s10  ;;  %v4702_v14 = vld [vmem:[#allocation71_spill] sm:$0xff] }
 0x1b1   : > { %919 = vrot.lane.b32.xlu1 %v2975_v27, %s2338_s10  ;;  %917 = vrot.lane.b32.xlu0 %v4700_v62, %s2338_s10 }
 0x1b2   : > { %v3391_v41 = vpop.permute.xlu2 %818 }
 0x1b3   : > { %v3393_v12 = vpop.permute.xlu1 %798  ;;  %v3395_v43 = vpop.permute.xlu0 %796 }
 0x1b4   : > { %4701 = vst [vmem:[#allocation141_spill] sm:$0xff] %v3395_v43  ;;  %v3410_v43 = vsel %vm491_vm1, %v868_v8, %v869_v10  ;;  %v3424_v8 = vsel %vm491_vm1, %v869_v10, %v871_v61  ;;  %v3439_v10 = vld [vmem:[%s2423_s5 + $0x38] sm:$0xff] }
 0x1b5   : > { %4703 = vst [vmem:[#allocation142_spill] sm:$0xff] %v3410_v43 }
 0x1b6   : > { %4704 = vst [vmem:[#allocation143_spill] sm:$0xff] %v3424_v8 }
 0x1b8   : > { %927 = vrot.lane.b32.xlu2 %v2998_v40, %s2338_s10 }
 0x1b9   : > { %925 = vrot.lane.b32.xlu1 %v3001_v51, %s2338_s10  ;;  %923 = vrot.lane.b32.xlu0 %v4702_v14, %s2338_s10 }
 0x1ba   : > { %v3405_v27 = vpop.permute.xlu2 %824 }
 0x1bb   : > { %v3407_v62 = vpop.permute.xlu1 %804  ;;  %v803_v3 = vpop.permute.xlu0 %802 }
 0x1c0   : > { %933 = vrot.lane.b32.xlu2 %v3410_v43, %s2338_s10 }
 0x1c1   : > { %931 = vrot.lane.b32.xlu1 %v3017_v55, %s2338_s10  ;;  %929 = vrot.lane.b32.xlu0 %v2995_v38, %s2338_s10 }
 0x1c2   : > { %v3418_v1 = vpop.permute.xlu2 %830 }
 0x1c3   : > { %v3421_v14 = vpop.permute.xlu1 %810  ;;  %v809_v40 = vpop.permute.xlu0 %808 }
 0x1c8   : > { %1073 = vrot.lane.b32.xlu2 %v2453_v13, %s2339_s11 }
 0x1c9   : > { %971 = vrot.lane.b32.xlu1 %v2426_v0, %s2340_s12  ;;  %935 = vrot.lane.b32.xlu0 %v3424_v8, %s2338_s10  ;;  %s4153_s10 = sand.u32 1, %s2324_s16  }
 0x1ca   : > { %v3432_v43 = vpop.permute.xlu2 %873  ;;  %s2062_s14 = sshll.u32 %s4153_s10, 8  ;;  %s1894_s28 = scalar_lea.sflag [#allocation3], %s4153_s10 }
 0x1cb   : > { %v3434_v11 = vpop.permute.xlu1 %816  ;;  %v815_v55 = vpop.permute.xlu0 %814  ;;  %s4167_s22 = scalar_lea.vmem [#allocation2], %s2062_s14 }
 0x1cc   : > { %s1914_s23 = sshll.u32 %s4167_s22, 4  ;;  %s1915_s23 = int_to_ptr.vmem [resolvable:$true] %s1914_s23 }
 0x1d0   : > { %1075 = vrot.lane.b32.xlu2 %v2474_v21, %s2339_s11 }
 0x1d1   : > { %973 = vrot.lane.b32.xlu1 %v3439_v10, %s2340_s12  ;;  %1174 = vrot.lane.b32.xlu0 %v2805_v47, %s2341_s13 }
 0x1d2   : > { %v3445_v0 = vpop.permute.xlu2 %879 }
 0x1d3   : > { %v3447_v13 = vpop.permute.xlu1 %822  ;;  %v3449_v61 = vpop.permute.xlu0 %820 }
 0x1d8   : > { %987 = vrot.lane.b32.xlu2 %v2558_v52, %s2340_s12 }
 0x1d9   : > { %975 = vrot.lane.b32.xlu1 %v2493_v28, %s2340_s12  ;;  %1176 = vrot.lane.b32.xlu0 %v2802_v9, %s2341_s13 }
 0x1da   : > { %v3457_v21 = vpop.permute.xlu2 %885 }
 0x1db   : > { %4705 = vst [vmem:[#allocation144_spill] sm:$0xff] %v3457_v21  ;;  %v3459_v8 = vpop.permute.xlu1 %828  ;;  %v3461_v47 = vpop.permute.xlu0 %826  ;;  %v1286_v21 = vsel %vm1270_vm2, %v2549_v49, %v2992_v15 }
 0x1e0   : > { %1178 = vrot.lane.b32.xlu2 %v4676_v42, %s2341_s13 }
 0x1e1   : > { %1089 = vrot.lane.b32.xlu1 %v4633_v16, %s2339_s11  ;;  %1077 = vrot.lane.b32.xlu0 %v2512_v36, %s2339_s11 }
 0x1e2   : > { %v3469_v52 = vpop.permute.xlu2 %891 }
 0x1e3   : > { %v3471_v28 = vpop.permute.xlu1 %834  ;;  %v3473_v9 = vpop.permute.xlu0 %832 }
 0x1e8   : > { %989 = vrot.lane.b32.xlu2 %v2552_v50, %s2340_s12  ;;  %v1319_v50 = vsel %vm1303_vm3, %v1286_v21, %v3085_v25 }
 0x1e9   : > { %977 = vrot.lane.b32.xlu1 %v2487_v26, %s2340_s12  ;;  %1190 = vrot.lane.b32.xlu0 %v4685_v34, %s2341_s13  ;;  %v1352_v26 = vsel %vm1336_vm4, %v1319_v50, %v3261_v5  ;;  %v1289_v5 = vsel %vm1270_vm2, %v2624_v30, %v3014_v57 }
 0x1ea   : > { %v3481_v42 = vpop.permute.xlu2 %897  ;;  %v1385_v34 = vsel %vm1369_vm5, %v1352_v26, %v803_v3  ;;  %v2179_v26 = vld [vmem:[%s2423_s5 + $0xa8] sm:$0xff] }
 0x1eb   : > { %v3483_v16 = vpop.permute.xlu1 %877  ;;  %v3485_v36 = vpop.permute.xlu0 %875 }
 0x1f0   : > { %1003 = vrot.lane.b32.xlu2 %v2612_v19, %s2340_s12 }
 0x1f1   : > { %1091 = vrot.lane.b32.xlu1 %v4632_v33, %s2339_s11  ;;  %1079 = vrot.lane.b32.xlu0 %v2509_v35, %s2339_s11  ;;  %v1322_v33 = vsel %vm1303_vm3, %v1289_v5, %v3097_v45  ;;  %v1292_v45 = vsel %vm1270_vm2, %v2615_v20, %v3029_v18  ;;  %v2180_v5 = vld [vmem:[%s2423_s5 + $0x98] sm:$0xff] }
 0x1f2   : > { %v904_v49 = vpop.permute.xlu2 %903  ;;  %v1355_v35 = vsel %vm1336_vm4, %v1322_v33, %v3279_v17 }
 0x1f3   : > { %v3501_v15 = vpop.permute.xlu1 %883  ;;  %v3504_v25 = vsel %vm1402_vm6, %v1385_v34, %v904_v49  ;;  %v3506_v19 = vpop.permute.xlu0 %881  ;;  %v1388_v3 = vsel %vm1369_vm5, %v1355_v35, %v809_v40  ;;  %v3539_v40 = vld [vmem:[%s2423_s5 + $0x60] sm:$0xff]  ;;  %v4706_v34 = vld [vmem:[#allocation51_spill] sm:$0xff] }
 0x1f4   : > { %v1285_v49 = vsel %vm1270_vm2, %v2179_v26, %v4706_v34  ;;  %v4712_v26 = vld [vmem:[#allocation99_spill] sm:$0xff] }
 0x1f5   : > { %v1318_v35 = vsel %vm1303_vm3, %v1285_v49, %v3123_v56  ;;  %v4713_v49 = vld [vmem:[#allocation24_spill] sm:$0xff] }
 0x1f8   : > { %1105 = vrot.lane.b32.xlu2 %v4651_v22, %s2339_s11 }
 0x1f9   : > { %1192 = vrot.lane.b32.xlu1 %v2873_v4, %s2341_s13  ;;  %1180 = vrot.lane.b32.xlu0 %v4675_v60, %s2341_s13  ;;  %v1325_v4 = vsel %vm1303_vm3, %v1292_v45, %v3109_v24  ;;  %v4708_v45 = vld [vmem:[#allocation86_spill] sm:$0xff] }
 0x1fa   : > { %v910_v21 = vpop.permute.xlu2 %909  ;;  %v1358_v60 = vsel %vm1336_vm4, %v1325_v4, %v3297_v58  ;;  %v1295_v58 = vsel %vm1270_vm2, %v2690_v6, %v3041_v53 }
 0x1fb   : > { %v3522_v50 = vpop.permute.xlu1 %889  ;;  %v3525_v30 = vsel %vm1402_vm6, %v1388_v3, %v910_v21  ;;  %v3527_v57 = vpop.permute.xlu0 %887  ;;  %v1391_v17 = vsel %vm1369_vm5, %v1358_v60, %v815_v55  ;;  %v1328_v33 = vsel %vm1303_vm3, %v1295_v58, %v3121_v54  ;;  %v1351_v54 = vsel %vm1336_vm4, %v1318_v35, %v3263_v2  ;;  %v3599_v60 = vld [vmem:[%s2423_s5 + $0xc8] sm:$0xff] }
 0x1fc   : > { %v1361_v53 = vsel %vm1336_vm4, %v1328_v33, %v3309_v39  ;;  %v1384_v39 = vsel %vm1369_vm5, %v1351_v54, %v3355_v44  ;;  %v4710_v44 = vld [vmem:[#allocation57_spill] sm:$0xff] }
 0x200   : > { %991 = vrot.lane.b32.xlu2 %v2546_v48, %s2340_s12 }
 0x201   : > { %979 = vrot.lane.b32.xlu1 %v3539_v40, %s2340_s12  ;;  %1206 = vrot.lane.b32.xlu0 %v2921_v7, %s2341_s13  ;;  %v4707_v7 = vld [vmem:[#allocation69_spill] sm:$0xff] }
 0x202   : > { %v916_v18 = vpop.permute.xlu2 %915  ;;  %v1284_v55 = vsel %vm1270_vm2, %v2180_v5, %v4707_v7  ;;  %v4714_v5 = vld [vmem:[#allocation100_spill] sm:$0xff] }
 0x203   : > { %v3546_v22 = vpop.permute.xlu1 %895  ;;  %v3549_v24 = vsel %vm1402_vm6, %v1391_v17, %v916_v18  ;;  %v3551_v48 = vpop.permute.xlu0 %893  ;;  %v1317_v6 = vsel %vm1303_vm3, %v1284_v55, %v3125_v63  ;;  %v1394_v63 = vsel %vm1369_vm5, %v1361_v53, %v3449_v61  ;;  %v4709_v61 = vld [vmem:[#allocation25_spill] sm:$0xff]  ;;  %v4711_v18 = vld [vmem:[#allocation75_spill] sm:$0xff]  ;;  %v4717_v53 = vld [vmem:[#allocation40_spill] sm:$0xff] }
 0x204   : > { %v1298_v4 = vsel %vm1270_vm2, %v4709_v61, %v4708_v45  ;;  %v3605_v17 = vld [vmem:[%s2423_s5 + $0xc0] sm:$0xff] }
 0x205   : > { %v1287_v58 = vsel %vm1270_vm2, %v3605_v17, %v4711_v18  ;;  %v1331_v34 = vsel %vm1303_vm3, %v1298_v4, %v4712_v26  ;;  %v4715_v55 = vld [vmem:[#allocation101_spill] sm:$0xff] }
 0x206   : > { %v1320_v33 = vsel %vm1303_vm3, %v1287_v58, %v4715_v55  ;;  %v1364_v35 = vsel %vm1336_vm4, %v1331_v34, %v3321_v23  ;;  %v4722_v58 = vld [vmem:[#allocation62_spill] sm:$0xff]  ;;  %v3650_v26 = vld [vmem:[%s2423_s5 + $0xe0] sm:$0xff] }
 0x207   : > { %v4723_v34 = vld [vmem:[#allocation78_spill] sm:$0xff] }
 0x208   : > { %1005 = vrot.lane.b32.xlu2 %v2615_v20, %s2340_s12  ;;  %v1350_v20 = vsel %vm1336_vm4, %v1317_v6, %v3211_v29  ;;  %v4716_v6 = vld [vmem:[#allocation50_spill] sm:$0xff] }
 0x209   : > { %1093 = vrot.lane.b32.xlu1 %v4640_v37, %s2339_s11  ;;  %1081 = vrot.lane.b32.xlu0 %v4628_v31, %s2339_s11  ;;  %v1383_v37 = vsel %vm1369_vm5, %v1350_v20, %v3393_v12  ;;  %v1288_v12 = vsel %vm1270_vm2, %v3599_v60, %v4710_v44  ;;  %v4718_v20 = vld [vmem:[#allocation115_spill] sm:$0xff] }
 0x20a   : > { %v922_v56 = vpop.permute.xlu2 %921  ;;  %v1321_v7 = vsel %vm1303_vm3, %v1288_v12, %v4714_v5  ;;  %v1353_v54 = vsel %vm1336_vm4, %v1320_v33, %v4718_v20  ;;  %v4721_v12 = vld [vmem:[#allocation32_spill] sm:$0xff]  ;;  %v4724_v5 = vld [vmem:[#allocation102_spill] sm:$0xff]  ;;  %v4725_v33 = vld [vmem:[#allocation103_spill] sm:$0xff] }
 0x20b   : > { %v902_v3 = vpop.permute.xlu1 %901  ;;  %v3587_v21 = vsel %vm1402_vm6, %v1394_v63, %v922_v56  ;;  %v900_v31 = vpop.permute.xlu0 %899  ;;  %v4719_v63 = vld [vmem:[#allocation125_spill] sm:$0xff]  ;;  %v2185_v55 = vld [vmem:[%s2423_s5 + $0xb0] sm:$0xff]  ;;  %v4727_v20 = vld [vmem:[#allocation132_spill] sm:$0xff] }
 0x20c   : > { %v3590_v29 = vsel %vm1402_vm6, %v1384_v39, %v902_v3  ;;  %v3593_v2 = vsel %vm1402_vm6, %v1383_v37, %v900_v31  ;;  %v1354_v56 = vsel %vm1336_vm4, %v1321_v7, %v4719_v63  ;;  %v1397_v39 = vsel %vm1369_vm5, %v1364_v35, %v3461_v47  ;;  %v4720_v47 = vld [vmem:[#allocation89_spill] sm:$0xff] }
 0x20d   : > { %v1387_v23 = vsel %vm1369_vm5, %v1354_v56, %v3367_v32  ;;  %v1386_v3 = vsel %vm1369_vm5, %v1353_v54, %v3407_v62  ;;  %v1301_v18 = vsel %vm1270_vm2, %v4721_v12, %v4720_v47  ;;  %v2183_v32 = vld [vmem:[%s2423_s5 + $0xf0] sm:$0xff]  ;;  %v3666_v63 = vld [vmem:[%s2423_s5 + $0x68] sm:$0xff] }
 0x20e   : > { %v1291_v62 = vsel %vm1270_vm2, %v2183_v32, %v4722_v58  ;;  %v1334_v7 = vsel %vm1303_vm3, %v1301_v18, %v4724_v5  ;;  %v4728_v56 = vld [vmem:[#allocation19_spill] sm:$0xff]  ;;  %v1538_v32 = vld [vmem:[%s4432_s1 + $0x20] sm:$0xf]  ;;  %v2188_v5 = vld [vmem:[%s2423_s5 + $0x108] sm:$0xff] }
 0x20f   : > { %v1324_v35 = vsel %vm1303_vm3, %v1291_v62, %v4725_v33  ;;  %v1367_v54 = vsel %vm1336_vm4, %v1334_v7, %v4727_v20  ;;  %2064 = vmatpush.msk.msra.mxu0 %vm1636_vm7, %v1538_v32  ;;  %2103 = vmatpush.msk.msra.mxu1 %vm1636_vm7, %v1538_v32  ;;  %v1536_v58 = vld [vmem:[%s4432_s1 + $0x10] sm:$0xff]  ;;  %v4731_v7 = vld [vmem:[#allocation81_spill] sm:$0xff] }
 0x210   : > { %1107 = vrot.lane.b32.xlu2 %v4713_v49, %s2339_s11  ;;  %v1290_v49 = vsel %vm1270_vm2, %v3650_v26, %v4723_v34  ;;  %2104 = vmatpush.msk.msra.mxu2 %vm1636_vm7, %v1538_v32  ;;  %v3701_v62 = vld [vmem:[%s2423_s5 + $0x110] sm:$0xff]  ;;  %v4730_v34 = vld [vmem:[#allocation68_spill] sm:$0xff] }
 0x211   : > { %1194 = vrot.lane.b32.xlu1 %v4716_v6, %s2341_s13  ;;  %1182 = vrot.lane.b32.xlu0 %v4717_v53, %s2341_s13  ;;  %v4726_v6 = vld [vmem:[#allocation104_spill] sm:$0xff]  ;;  %v4732_v33 = vld [vmem:[#allocation106_spill] sm:$0xff] }
 0x212   : > { %v928_v37 = vpop.permute.xlu2 %927  ;;  %v1323_v53 = vsel %vm1303_vm3, %v1290_v49, %v4726_v6  ;;  %2105 = vmatpush.msk.msra.mxu3 %vm1636_vm7, %v1538_v32  ;;  %v1294_v49 = vsel %vm1270_vm2, %v3701_v62, %v4730_v34  ;;  %v4733_v6 = vld [vmem:[#allocation107_spill] sm:$0xff]  ;;  %v4734_v20 = vld [vmem:[#allocation18_spill] sm:$0xff]  ;;  %v1534_v32 = vld [vmem:[%s4432_s1] sm:$0xff] }
 0x213   : > { %v908_v31 = vpop.permute.xlu1 %907  ;;  %v3635_v45 = vsel %vm1402_vm6, %v1397_v39, %v928_v37  ;;  %v906_v61 = vpop.permute.xlu0 %905  ;;  %v1356_v39 = vsel %vm1336_vm4, %v1323_v53, %v4728_v56  ;;  %v4729_v37 = vld [vmem:[#allocation129_spill] sm:$0xff] }
 0x214   : > { %v3638_v4 = vsel %vm1402_vm6, %v1387_v23, %v908_v31  ;;  %v3641_v44 = vsel %vm1402_vm6, %v1386_v3, %v906_v61  ;;  %v1357_v23 = vsel %vm1336_vm4, %v1324_v35, %v4729_v37  ;;  %v1400_v3 = vsel %vm1369_vm5, %v1367_v54, %v3473_v9  ;;  %v4735_v54 = vld [vmem:[#allocation12_spill] sm:$0xff]  ;;  %v1535_v56 = vld [vmem:[%s4432_s1 + $0x8] sm:$0xff] }
 0x215   : > { %v1390_v61 = vsel %vm1369_vm5, %v1357_v23, %v3379_v46  ;;  %v1389_v47 = vsel %vm1369_vm5, %v1356_v39, %v3421_v14  ;;  %v1537_v14 = vld [vmem:[%s4432_s1 + $0x18] sm:$0xff]  ;;  %v1327_v35 = vsel %vm1303_vm3, %v1294_v49, %v4732_v33  ;;  %v4737_v23 = vld [vmem:[#allocation130_spill] sm:$0xff]  ;;  %v4741_v33 = vld [vmem:[#allocation109_spill] sm:$0xff] }
 0x216   : > { %1652 = vmatpush.msra.mxu0 %v1537_v14  ;;  %2106 = vmatpush.msra.mxu1 %v1537_v14  ;;  %v4736_v39 = vld [vmem:[#allocation120_spill] sm:$0xff]  ;;  %v3747_v49 = vld [vmem:[%s2423_s5 + $0x128] sm:$0xff] }
 0x217   : > { %2107 = vmatpush.msra.mxu2 %v1537_v14  ;;  %2108 = vmatpush.msra.mxu3 %v1537_v14 }
 0x218   : > { %993 = vrot.lane.b32.xlu2 %v2185_v55, %s2340_s12  ;;  %v1293_v55 = vsel %vm1270_vm2, %v2188_v5, %v4731_v7  ;;  %1653 = vmatpush.msra.mxu0 %v1536_v58 }
 0x219   : > { %981 = vrot.lane.b32.xlu1 %v3666_v63, %s2340_s12  ;;  %1208 = vrot.lane.b32.xlu0 %v4697_v59, %s2341_s13  ;;  %v1326_v53 = vsel %vm1303_vm3, %v1293_v55, %v4733_v6  ;;  %v4740_v55 = vld [vmem:[#allocation49_spill] sm:$0xff]  ;;  %v4742_v6 = vld [vmem:[#allocation110_spill] sm:$0xff] }
 0x21a   : > { %v934_v31 = vpop.permute.xlu2 %933  ;;  %v1359_v37 = vsel %vm1336_vm4, %v1326_v53, %v4736_v39  ;;  %1654 = vmatpush.msra.mxu0 %v1535_v56  ;;  %2109 = vmatpush.msra.mxu1 %v1536_v58 }
 0x21b   : > { %v914_v12 = vpop.permute.xlu1 %913  ;;  %v3683_v18 = vsel %vm1402_vm6, %v1400_v3, %v934_v31  ;;  %v912_v59 = vpop.permute.xlu0 %911  ;;  %v1360_v3 = vsel %vm1336_vm4, %v1327_v35, %v4737_v23  ;;  %2110 = vmatpush.msra.mxu2 %v1536_v58  ;;  %2111 = vmatpush.msra.mxu3 %v1536_v58 }
 0x21c   : > { %v3689_v9 = vsel %vm1402_vm6, %v1390_v61, %v914_v12  ;;  %v3692_v46 = vsel %vm1402_vm6, %v1389_v47, %v912_v59  ;;  %v1393_v61 = vsel %vm1369_vm5, %v1360_v3, %v3391_v41  ;;  %v1392_v47 = vsel %vm1369_vm5, %v1359_v37, %v3434_v11  ;;  %1655 = vmatpush.msra.mxu0 %v1534_v32  ;;  %v3741_v41 = vld [vmem:[%s2423_s5 + $0x138] sm:$0xff]  ;;  %v4738_v11 = vld [vmem:[#allocation74_spill] sm:$0xff]  ;;  %v4745_v37 = vld [vmem:[#allocation37_spill] sm:$0xff] }
 0x21d   : > { %2112 = vmatpush.msra.mxu1 %v1535_v56  ;;  %2113 = vmatpush.msra.mxu2 %v1535_v56  ;;  %v1297_v58 = vsel %vm1270_vm2, %v3741_v41, %v4738_v11 }
 0x21e   : > { %2114 = vmatpush.msra.mxu3 %v1535_v56  ;;  %v1330_v35 = vsel %vm1303_vm3, %v1297_v58, %v4741_v33  ;;  %v4744_v56 = vld [vmem:[#allocation123_spill] sm:$0xff] }
 0x21f   : > { %2115 = vmatpush.msra.mxu1 %v1534_v32  ;;  %2116 = vmatpush.msra.mxu2 %v1534_v32  ;;  %v1363_v23 = vsel %vm1336_vm4, %v1330_v35, %v4745_v37  ;;  %v2192_v58 = vld [vmem:[%s2423_s5 + $0x158] sm:$0xff] }
 0x220   : > { %1007 = vrot.lane.b32.xlu2 %v2188_v5, %s2340_s12  ;;  %2117 = vmatpush.msra.mxu3 %v1534_v32  ;;  %v4739_v5 = vld [vmem:[#allocation83_spill] sm:$0xff] }
 0x221   : > { %1095 = vrot.lane.b32.xlu1 %v4734_v20, %s2339_s11  ;;  %1083 = vrot.lane.b32.xlu0 %v4735_v54, %s2339_s11  ;;  %v1296_v7 = vsel %vm1270_vm2, %v3747_v49, %v4739_v5  ;;  %v4743_v20 = vld [vmem:[#allocation39_spill] sm:$0xff]  ;;  %v4746_v5 = vld [vmem:[#allocation77_spill] sm:$0xff] }
 0x222   : > { %v3725_v31 = vpop.permute.xlu2 %1073  ;;  %v1329_v53 = vsel %vm1303_vm3, %v1296_v7, %v4742_v6  ;;  %v2191_v54 = vld [vmem:[%s2423_s5 + $0x150] sm:$0xff]  ;;  %v1300_v7 = vsel %vm1270_vm2, %v2192_v58, %v4746_v5  ;;  %v4750_v6 = vld [vmem:[#allocation112_spill] sm:$0xff] }
 0x223   : > { %v920_v12 = vpop.permute.xlu1 %919  ;;  %v918_v59 = vpop.permute.xlu0 %917  ;;  %v1362_v39 = vsel %vm1336_vm4, %v1329_v53, %v4744_v56  ;;  %v4752_v56 = vld [vmem:[#allocation23_spill] sm:$0xff] }
 0x224   : > { %v3735_v14 = vsel %vm1402_vm6, %v1393_v61, %v920_v12  ;;  %v3738_v34 = vsel %vm1402_vm6, %v1392_v47, %v918_v59  ;;  %v1396_v61 = vsel %vm1369_vm5, %v1363_v23, %v3405_v27  ;;  %v1395_v47 = vsel %vm1369_vm5, %v1362_v39, %v3447_v13  ;;  %v4748_v27 = vld [vmem:[#allocation67_spill] sm:$0xff]  ;;  %v4753_v39 = vld [vmem:[#allocation124_spill] sm:$0xff] }
 0x225   : > { %v4749_v13 = vld [vmem:[#allocation111_spill] sm:$0xff] }
 0x226   : > { %v1333_v35 = vsel %vm1303_vm3, %v1300_v7, %v4749_v13 }
 0x228   : > { %1196 = vrot.lane.b32.xlu2 %v4740_v55, %s2341_s13  ;;  %v4747_v55 = vld [vmem:[#allocation85_spill] sm:$0xff] }
 0x229   : > { %1184 = vrot.lane.b32.xlu1 %v4743_v20, %s2341_s13  ;;  %1019 = vrot.lane.b32.xlu0 %v2191_v54, %s2340_s12  ;;  %v1299_v33 = vsel %vm1270_vm2, %v2191_v54, %v4747_v55  ;;  %v4751_v20 = vld [vmem:[#allocation30_spill] sm:$0xff]  ;;  %v4754_v54 = vld [vmem:[#allocation133_spill] sm:$0xff] }
 0x22a   : > { %v3766_v3 = vpop.permute.xlu2 %1075  ;;  %v1332_v53 = vsel %vm1303_vm3, %v1299_v33, %v4750_v6  ;;  %v1366_v23 = vsel %vm1336_vm4, %v1333_v35, %v4754_v54  ;;  %v3810_v33 = vld [vmem:[%s2423_s5 + $0x170] sm:$0xff]  ;;  %v3820_v35 = vld [vmem:[%s2423_s5 + $0x78] sm:$0xff] }
 0x22b   : > { %v926_v12 = vpop.permute.xlu1 %925  ;;  %v924_v59 = vpop.permute.xlu0 %923  ;;  %v1365_v37 = vsel %vm1336_vm4, %v1332_v53, %v4753_v39  ;;  %v4757_v6 = vld [vmem:[#allocation128_spill] sm:$0xff] }
 0x22c   : > { %v3773_v32 = vsel %vm1402_vm6, %v1396_v61, %v926_v12  ;;  %v3776_v11 = vsel %vm1402_vm6, %v1395_v47, %v924_v59  ;;  %v1399_v47 = vsel %vm1369_vm5, %v1366_v23, %v3418_v1  ;;  %v1398_v12 = vsel %vm1369_vm5, %v1365_v37, %v3459_v8  ;;  %v4756_v1 = vld [vmem:[#allocation113_spill] sm:$0xff]  ;;  %v4758_v39 = vld [vmem:[#allocation48_spill] sm:$0xff] }
 0x230   : > { %1210 = vrot.lane.b32.xlu2 %v4748_v27, %s2341_s13  ;;  %v4755_v27 = vld [vmem:[#allocation88_spill] sm:$0xff] }
 0x231   : > { %1121 = vrot.lane.b32.xlu1 %v4751_v20, %s2339_s11  ;;  %1109 = vrot.lane.b32.xlu0 %v4752_v56, %s2339_s11  ;;  %v1302_v13 = vsel %vm1270_vm2, %v3810_v33, %v4755_v27  ;;  %v2195_v56 = vld [vmem:[%s2423_s5] sm:$0xff]  ;;  %v4761_v27 = vld [vmem:[#allocation135_spill] sm:$0xff] }
 0x232   : > { %v3797_v61 = vpop.permute.xlu2 %987  ;;  %v1335_v8 = vsel %vm1303_vm3, %v1302_v13, %v4756_v1  ;;  %v1271_v37 = vsel %vm1270_vm2, %v2195_v56, %v4758_v39  ;;  %v2196_v56 = vld [vmem:[%s2423_s5 + $0x8] sm:$0xff] }
 0x233   : > { %v932_v59 = vpop.permute.xlu1 %931  ;;  %v930_v5 = vpop.permute.xlu0 %929  ;;  %v1368_v53 = vsel %vm1336_vm4, %v1335_v8, %v4757_v6  ;;  %v4762_v8 = vld [vmem:[#allocation17_spill] sm:$0xff]  ;;  %v4763_v6 = vld [vmem:[#allocation11_spill] sm:$0xff] }
 0x234   : > { %v3804_v7 = vsel %vm1402_vm6, %v1399_v47, %v932_v59  ;;  %v3807_v55 = vsel %vm1402_vm6, %v1398_v12, %v930_v5  ;;  %v4759_v47 = vld [vmem:[#allocation80_spill] sm:$0xff]  ;;  %v4764_v39 = vld [vmem:[#allocation53_spill] sm:$0xff] }
 0x235   : > { %v1304_v12 = vsel %vm1303_vm3, %v1271_v37, %v4759_v47 }
 0x238   : > { %995 = vrot.lane.b32.xlu2 %v3605_v17, %s2340_s12  ;;  %v1401_v17 = vsel %vm1369_vm5, %v1368_v53, %v3471_v28 }
 0x239   : > { %983 = vrot.lane.b32.xlu1 %v3820_v35, %s2340_s12  ;;  %1222 = vrot.lane.b32.xlu0 %v3001_v51, %s2341_s13  ;;  %v4760_v51 = vld [vmem:[#allocation15_spill] sm:$0xff] }
 0x23a   : > { %v1179_v20 = vpop.permute.xlu2 %1178  ;;  %v1337_v5 = vsel %vm1336_vm4, %v1304_v12, %v4760_v51  ;;  %v4766_v12 = vld [vmem:[#allocation105_spill] sm:$0xff] }
 0x23b   : > { %v972_v54 = vpop.permute.xlu1 %971  ;;  %v936_v23 = vpop.permute.xlu0 %935  ;;  %v1370_v13 = vsel %vm1369_vm5, %v1337_v5, %v4761_v27  ;;  %v4767_v5 = vld [vmem:[#allocation134_spill] sm:$0xff] }
 0x23c   : > { %v3836_v59 = vsel %vm1402_vm6, %v1401_v17, %v936_v23  ;;  %v1403_v1 = vsel %vm1402_vm6, %v1370_v13, %v3432_v43  ;;  %v1272_v43 = vsel %vm1270_vm2, %v2196_v56, %v4764_v39 }
 0x23d   : > { %v1436_v28 = vsel %vm1435_vm8, %v1403_v1, %v972_v54  ;;  %v4765_v54 = vld [vmem:[#allocation92_spill] sm:$0xff] }
 0x23e   : > { %v1305_v23 = vsel %vm1303_vm3, %v1272_v43, %v4765_v54 }
 0x23f   : > { %v1338_v51 = vsel %vm1336_vm4, %v1305_v23, %v4766_v12  ;;  %v4772_v23 = vld [vmem:[#allocation114_spill] sm:$0xff]  ;;  %v4774_v12 = vld [vmem:[#allocation35_spill] sm:$0xff] }
 0x240   : > { %1009 = vrot.lane.b32.xlu2 %v3701_v62, %s2340_s12  ;;  %v1469_v62 = vsel %vm1468_vm9, %v1436_v28, %v3725_v31  ;;  %v1371_v27 = vsel %vm1369_vm5, %v1338_v51, %v4767_v5  ;;  %v4768_v31 = vld [vmem:[#allocation56_spill] sm:$0xff]  ;;  %v4769_v28 = vld [vmem:[#allocation45_spill] sm:$0xff]  ;;  %v4776_v5 = vld [vmem:[#allocation22_spill] sm:$0xff] }
 0x241   : > { %1097 = vrot.lane.b32.xlu1 %v4762_v8, %s2339_s11  ;;  %1085 = vrot.lane.b32.xlu0 %v4763_v6, %s2339_s11  ;;  %v1404_v13 = vsel %vm1402_vm6, %v1371_v27, %v3485_v36  ;;  %v2197_v36 = vld [vmem:[%s2423_s5 + $0x18] sm:$0xff]  ;;  %v4775_v51 = vld [vmem:[#allocation29_spill] sm:$0xff] }
 0x242   : > { %v3851_v53 = vpop.permute.xlu2 %989 }
 0x243   : > { %v974_v37 = vpop.permute.xlu1 %973  ;;  %v1175_v17 = vpop.permute.xlu0 %1174 }
 0x244   : > { %v1502_v47 = vsel %vm1501_vm10, %v1469_v62, %v1175_v17  ;;  %v1437_v1 = vsel %vm1435_vm8, %v1404_v13, %v974_v37  ;;  %v4770_v37 = vld [vmem:[#allocation47_spill] sm:$0xff] }
 0x245   : > { %2065 = vmatmul.msk.f32.vlgmr.msra.gmra.mxu0 %vm1539_vm11, %v1502_v47  ;;  %v1470_v39 = vsel %vm1468_vm9, %v1437_v1, %v3766_v3  ;;  %v1273_v17 = vsel %vm1270_vm2, %v2197_v36, %v4770_v37  ;;  %v4771_v62 = vld [vmem:[#allocation91_spill] sm:$0xff]  ;;  %v4773_v47 = vld [vmem:[#allocation66_spill] sm:$0xff] }
 0x246   : > { %v1306_v54 = vsel %vm1303_vm3, %v1273_v17, %v4771_v62  ;;  %v4778_v37 = vld [vmem:[#allocation95_spill] sm:$0xff] }
 0x248   : > { %1198 = vrot.lane.b32.xlu2 %v4768_v31, %s2341_s13 }
 0x249   : > { %1186 = vrot.lane.b32.xlu1 %v4769_v28, %s2341_s13  ;;  %1021 = vrot.lane.b32.xlu0 %v2192_v58, %s2340_s12  ;;  %v1339_v58 = vsel %vm1336_vm4, %v1306_v54, %v4772_v23  ;;  %v3915_v23 = vld [vmem:[%s2423_s5 + $0x80] sm:$0xff] }
 0x24a   : > { %v3874_v8 = vpop.permute.xlu2 %1003  ;;  %v1372_v3 = vsel %vm1369_vm5, %v1339_v58, %v4774_v12 }
 0x24b   : > { %v976_v6 = vpop.permute.xlu1 %975  ;;  %v1177_v56 = vpop.permute.xlu0 %1176  ;;  %v1405_v27 = vsel %vm1402_vm6, %v1372_v3, %v3483_v16  ;;  %v4779_v16 = vld [vmem:[#allocation119_spill] sm:$0xff] }
 0x24c   : > { %v1503_v43 = vsel %vm1501_vm10, %v1470_v39, %v1177_v56  ;;  %v1438_v1 = vsel %vm1435_vm8, %v1405_v27, %v976_v6  ;;  %v4777_v39 = vld [vmem:[#allocation42_spill] sm:$0xff]  ;;  %v4780_v6 = vld [vmem:[#allocation131_spill] sm:$0xff] }
 0x24d   : > { %2066 = vmatmul.msk.f32.gmra.mxu0 %vm1539_vm11, %v1503_v43  ;;  %v1279_v43 = vsel %vm1270_vm2, %v3539_v40, %v4777_v39  ;;  %v4783_v27 = vld [vmem:[#allocation10_spill] sm:$0xff] }
 0x24e   : > { %v1312_v17 = vsel %vm1303_vm3, %v1279_v43, %v4778_v37  ;;  %v4785_v43 = vld [vmem:[#allocation64_spill] sm:$0xff]  ;;  %v4786_v37 = vld [vmem:[#allocation82_spill] sm:$0xff] }
 0x24f   : > { %v1345_v62 = vsel %vm1336_vm4, %v1312_v17, %v4779_v16  ;;  %v4787_v16 = vld [vmem:[#allocation87_spill] sm:$0xff] }
 0x250   : > { %1212 = vrot.lane.b32.xlu2 %v4773_v47, %s2341_s13  ;;  %v1378_v54 = vsel %vm1369_vm5, %v1345_v62, %v4780_v6  ;;  %v4788_v6 = vld [vmem:[#allocation13_spill] sm:$0xff] }
 0x251   : > { %1123 = vrot.lane.b32.xlu1 %v4775_v51, %s2339_s11  ;;  %1111 = vrot.lane.b32.xlu0 %v4776_v5, %s2339_s11  ;;  %v1411_v40 = vsel %vm1402_vm6, %v1378_v54, %v3522_v50  ;;  %v2199_v51 = vld [vmem:[%s2423_s5 + $0x120] sm:$0xff] }
 0x252   : > { %v1106_v13 = vpop.permute.xlu2 %1105  ;;  %v1444_v58 = vsel %vm1435_vm8, %v1411_v40, %v3797_v61  ;;  %v4782_v5 = vld [vmem:[#allocation16_spill] sm:$0xff]  ;;  %v4789_v40 = vld [vmem:[#allocation118_spill] sm:$0xff] }
 0x253   : > { %v1090_v31 = vpop.permute.xlu1 %1089  ;;  %v1078_v28 = vpop.permute.xlu0 %1077 }
 0x254   : > { %v1471_v56 = vsel %vm1468_vm9, %v1438_v1, %v1078_v28  ;;  %v1477_v12 = vsel %vm1468_vm9, %v1444_v58, %v1090_v31  ;;  %v2200_v28 = vld [vmem:[%s2423_s5 + $0x20] sm:$0xff] }
 0x255   : > { %v1504_v36 = vsel %vm1501_vm10, %v1471_v56, %v1179_v20  ;;  %v4781_v20 = vld [vmem:[#allocation76_spill] sm:$0xff]  ;;  %v4790_v58 = vld [vmem:[#allocation137_spill] sm:$0xff] }
 0x256   : > { %2067 = vmatmul.msk.f32.gmra.mxu0 %vm1539_vm11, %v1504_v36  ;;  %v4784_v56 = vld [vmem:[#allocation52_spill] sm:$0xff]  ;;  %v1280_v36 = vsel %vm1270_vm2, %v3666_v63, %v4785_v43  ;;  %v4792_v63 = vld [vmem:[#allocation55_spill] sm:$0xff] }
 0x257   : > { %v1274_v39 = vsel %vm1270_vm2, %v2200_v28, %v4784_v56  ;;  %v1313_v62 = vsel %vm1303_vm3, %v1280_v36, %v4787_v16  ;;  %v2201_v28 = vld [vmem:[%s2423_s5 + $0x168] sm:$0xff] }
 0x258   : > { %997 = vrot.lane.b32.xlu2 %v3599_v60, %s2340_s12  ;;  %v1307_v17 = vsel %vm1303_vm3, %v1274_v39, %v4786_v37 }
 0x259   : > { %985 = vrot.lane.b32.xlu1 %v3915_v23, %s2340_s12  ;;  %1224 = vrot.lane.b32.xlu0 %v4781_v20, %s2341_s13  ;;  %v1340_v54 = vsel %vm1336_vm4, %v1307_v17, %v4788_v6  ;;  %v1346_v20 = vsel %vm1336_vm4, %v1313_v62, %v4789_v40 }
 0x25a   : > { %v3923_v47 = vpop.permute.xlu2 %991 }
 0x25b   : > { %v978_v60 = vpop.permute.xlu1 %977  ;;  %v1191_v3 = vpop.permute.xlu0 %1190 }
 0x25c   : > { %v1510_v50 = vsel %vm1501_vm10, %v1477_v12, %v1191_v3  ;;  %v1373_v12 = vsel %vm1369_vm5, %v1340_v54, %v4790_v58  ;;  %v4791_v3 = vld [vmem:[#allocation140_spill] sm:$0xff]  ;;  %v4797_v58 = vld [vmem:[#allocation21_spill] sm:$0xff] }
 0x25d   : > { %2073 = vmatmul.msk.f32.vlgmr.msra.gmra.mxu1 %vm1539_vm11, %v1510_v50  ;;  %v1379_v50 = vsel %vm1369_vm5, %v1346_v20, %v4791_v3 }
 0x260   : > { %1011 = vrot.lane.b32.xlu2 %v2199_v51, %s2340_s12  ;;  %v1406_v51 = vsel %vm1402_vm6, %v1373_v12, %v3445_v0  ;;  %v2202_v12 = vld [vmem:[%s2423_s5 + $0xd8] sm:$0xff] }
 0x261   : > { %1099 = vrot.lane.b32.xlu1 %v4782_v5, %s2339_s11  ;;  %1087 = vrot.lane.b32.xlu0 %v4783_v27, %s2339_s11  ;;  %v1412_v5 = vsel %vm1402_vm6, %v1379_v50, %v3469_v52  ;;  %v4793_v27 = vld [vmem:[#allocation44_spill] sm:$0xff]  ;;  %v1439_v39 = vsel %vm1435_vm8, %v1406_v51, %v978_v60  ;;  %v4795_v60 = vld [vmem:[#allocation34_spill] sm:$0xff]  ;;  %v4799_v51 = vld [vmem:[#allocation63_spill] sm:$0xff] }
 0x262   : > { %v3934_v61 = vpop.permute.xlu2 %1005  ;;  %v1445_v56 = vsel %vm1435_vm8, %v1412_v5, %v3851_v53  ;;  %v4794_v53 = vld [vmem:[#allocation65_spill] sm:$0xff]  ;;  %v4798_v50 = vld [vmem:[#allocation36_spill] sm:$0xff]  ;;  %v1281_v5 = vsel %vm1270_vm2, %v3820_v35, %v4799_v51  ;;  %v4806_v35 = vld [vmem:[#allocation54_spill] sm:$0xff] }
 0x263   : > { %v1092_v1 = vpop.permute.xlu1 %1091  ;;  %v1080_v31 = vpop.permute.xlu0 %1079 }
 0x264   : > { %v1478_v36 = vsel %vm1468_vm9, %v1445_v56, %v1092_v1  ;;  %v1472_v37 = vsel %vm1468_vm9, %v1439_v39, %v1080_v31  ;;  %v4796_v1 = vld [vmem:[#allocation28_spill] sm:$0xff]  ;;  %v1452_v31 = vsel %vm1435_vm8, %v3641_v44, %v3874_v8  ;;  %v4801_v56 = vld [vmem:[#allocation98_spill] sm:$0xff] }
 0x265   : > { %v1485_v6 = vsel %vm1468_vm9, %v1452_v31, %v1106_v13  ;;  %v2203_v13 = vld [vmem:[%s2423_s5 + $0x30] sm:$0xff]  ;;  %v1314_v39 = vsel %vm1303_vm3, %v1281_v5, %v4801_v56 }
 0x266   : > { %v4810_v5 = vld [vmem:[#allocation46_spill] sm:$0xff] }
 0x268   : > { %1200 = vrot.lane.b32.xlu2 %v4792_v63, %s2341_s13  ;;  %v1275_v63 = vsel %vm1270_vm2, %v2203_v13, %v4798_v50 }
 0x269   : > { %1188 = vrot.lane.b32.xlu1 %v4793_v27, %s2341_s13  ;;  %1023 = vrot.lane.b32.xlu0 %v2201_v28, %s2340_s12  ;;  %v4800_v27 = vld [vmem:[#allocation94_spill] sm:$0xff] }
 0x26a   : > { %v1108_v43 = vpop.permute.xlu2 %1107  ;;  %v1308_v28 = vsel %vm1303_vm3, %v1275_v63, %v4800_v27  ;;  %v1282_v27 = vsel %vm1270_vm2, %v3915_v23, %v4810_v5  ;;  %v2205_v5 = vld [vmem:[%s2423_s5 + $0x188] sm:$0xff] }
 0x26b   : > { %v1193_v0 = vpop.permute.xlu1 %1192  ;;  %v1181_v17 = vpop.permute.xlu0 %1180 }
 0x26c   : > { %v1505_v52 = vsel %vm1501_vm10, %v1472_v37, %v1181_v17  ;;  %v1511_v16 = vsel %vm1501_vm10, %v1478_v36, %v1193_v0  ;;  %v4802_v36 = vld [vmem:[#allocation108_spill] sm:$0xff]  ;;  %v4803_v37 = vld [vmem:[#allocation14_spill] sm:$0xff] }
 0x26d   : > { %2068 = vmatmul.msk.f32.gmra.mxu0 %vm1539_vm11, %v1505_v52  ;;  %2074 = vmatmul.msk.f32.gmra.mxu1 %vm1539_vm11, %v1511_v16  ;;  %v1347_v0 = vsel %vm1336_vm4, %v1314_v39, %v4803_v37  ;;  %v4804_v17 = vld [vmem:[#allocation136_spill] sm:$0xff]  ;;  %v4812_v39 = vld [vmem:[#allocation122_spill] sm:$0xff] }
 0x26e   : > { %v4805_v16 = vld [vmem:[#allocation60_spill] sm:$0xff] }
 0x270   : > { %1214 = vrot.lane.b32.xlu2 %v4794_v53, %s2341_s13  ;;  %v1380_v53 = vsel %vm1369_vm5, %v1347_v0, %v4805_v16 }
 0x271   : > { %1125 = vrot.lane.b32.xlu1 %v4795_v60, %s2339_s11  ;;  %1113 = vrot.lane.b32.xlu0 %v4796_v1, %s2339_s11  ;;  %v1413_v1 = vsel %vm1402_vm6, %v1380_v53, %v3551_v48  ;;  %v4816_v53 = vld [vmem:[#allocation38_spill] sm:$0xff] }
 0x272   : > { %v994_v62 = vpop.permute.xlu2 %993  ;;  %v1446_v31 = vsel %vm1435_vm8, %v1413_v1, %v3923_v47  ;;  %v4809_v47 = vld [vmem:[#allocation27_spill] sm:$0xff] }
 0x273   : > { %v980_v54 = vpop.permute.xlu1 %979  ;;  %v1207_v40 = vpop.permute.xlu0 %1206 }
 0x274   : > { %v1518_v20 = vsel %vm1501_vm10, %v1485_v6, %v1207_v40 }
 0x275   : > { %2081 = vmatmul.msk.f32.vlgmr.msra.gmra.mxu2 %vm1539_vm11, %v1518_v20 }
 0x278   : > { %1101 = vrot.lane.b32.xlu2 %v4797_v58, %s2339_s11 }
 0x279   : > { %999 = vrot.lane.b32.xlu1 %v2202_v12, %s2340_s12  ;;  %1226 = vrot.lane.b32.xlu0 %v2995_v38, %s2341_s13  ;;  %v1341_v38 = vsel %vm1336_vm4, %v1308_v28, %v4802_v36  ;;  %v4811_v28 = vld [vmem:[#allocation97_spill] sm:$0xff] }
 0x27a   : > { %v3991_v3 = vpop.permute.xlu2 %1007  ;;  %v1374_v52 = vsel %vm1369_vm5, %v1341_v38, %v4804_v17  ;;  %v1315_v56 = vsel %vm1303_vm3, %v1282_v27, %v4811_v28  ;;  %v4815_v38 = vld [vmem:[#allocation79_spill] sm:$0xff]  ;;  %v2206_v27 = vld [vmem:[%s2423_s5 + $0x140] sm:$0xff]  ;;  %v4824_v28 = vld [vmem:[#allocation142_spill] sm:$0xff] }
 0x27b   : > { %v1094_v44 = vpop.permute.xlu1 %1093  ;;  %v1082_v8 = vpop.permute.xlu0 %1081  ;;  %v1407_v60 = vsel %vm1402_vm6, %v1374_v52, %v3506_v19  ;;  %v1348_v36 = vsel %vm1336_vm4, %v1315_v56, %v4812_v39 }
 0x27c   : > { %v1440_v6 = vsel %vm1435_vm8, %v1407_v60, %v980_v54  ;;  %v1479_v20 = vsel %vm1468_vm9, %v1446_v31, %v1094_v44  ;;  %v1453_v54 = vsel %vm1435_vm8, %v3638_v4, %v3934_v61  ;;  %v4813_v4 = vld [vmem:[#allocation20_spill] sm:$0xff]  ;;  %v4814_v61 = vld [vmem:[#allocation43_spill] sm:$0xff]  ;;  %v4817_v60 = vld [vmem:[#allocation93_spill] sm:$0xff] }
 0x27d   : > { %v1473_v58 = vsel %vm1468_vm9, %v1440_v6, %v1082_v8  ;;  %v1486_v8 = vsel %vm1468_vm9, %v1453_v54, %v1108_v43  ;;  %v1381_v43 = vsel %vm1369_vm5, %v1348_v36, %v4814_v61  ;;  %v4818_v31 = vld [vmem:[#allocation117_spill] sm:$0xff]  ;;  %v1454_v54 = vsel %vm1435_vm8, %v3525_v30, %v3991_v3  ;;  %v4825_v61 = vld [vmem:[#allocation70_spill] sm:$0xff] }
 0x27e   : > { %v1414_v23 = vsel %vm1402_vm6, %v1381_v43, %v3546_v22  ;;  %v4819_v6 = vld [vmem:[#allocation41_spill] sm:$0xff] }
 0x27f   : > { %v1447_v0 = vsel %vm1435_vm8, %v1414_v23, %v994_v62 }
 0x280   : > { %1202 = vrot.lane.b32.xlu2 %v4806_v35, %s2341_s13  ;;  %v1276_v35 = vsel %vm1270_vm2, %v3439_v10, %v4816_v53  ;;  %v2204_v10 = vld [vmem:[%s2423_s5 + $0x180] sm:$0xff] }
 0x281   : > { %1025 = vrot.lane.b32.xlu1 %v3810_v33, %s2340_s12  ;;  %1013 = vrot.lane.b32.xlu0 %v3747_v49, %s2340_s12  ;;  %v4807_v49 = vld [vmem:[#allocation73_spill] sm:$0xff]  ;;  %v1309_v1 = vsel %vm1303_vm3, %v1276_v35, %v4817_v60  ;;  %v4831_v60 = vld [vmem:[#allocation31_spill] sm:$0xff] }
 0x282   : > { %v1197_v40 = vpop.permute.xlu2 %1196  ;;  %v4808_v33 = vld [vmem:[#allocation33_spill] sm:$0xff]  ;;  %v1342_v22 = vsel %vm1336_vm4, %v1309_v1, %v4818_v31 }
 0x283   : > { %v1195_v19 = vpop.permute.xlu1 %1194  ;;  %v1183_v12 = vpop.permute.xlu0 %1182  ;;  %v1375_v62 = vsel %vm1369_vm5, %v1342_v22, %v4819_v6  ;;  %v4829_v53 = vld [vmem:[#allocation141_spill] sm:$0xff] }
 0x284   : > { %v1506_v48 = vsel %vm1501_vm10, %v1473_v58, %v1183_v12  ;;  %v1512_v13 = vsel %vm1501_vm10, %v1479_v20, %v1195_v19  ;;  %v4820_v20 = vld [vmem:[#allocation61_spill] sm:$0xff]  ;;  %v1408_v58 = vsel %vm1402_vm6, %v1375_v62, %v3501_v15  ;;  %v4821_v15 = vld [vmem:[#allocation72_spill] sm:$0xff] }
 0x285   : > { %2069 = vmatmul.msk.f32.gmra.mxu0 %vm1539_vm11, %v1506_v48  ;;  %2075 = vmatmul.msk.f32.gmra.mxu1 %vm1539_vm11, %v1512_v13 }
 0x288   : > { %1216 = vrot.lane.b32.xlu2 %v4807_v49, %s2341_s13 }
 0x289   : > { %1127 = vrot.lane.b32.xlu1 %v4808_v33, %s2339_s11  ;;  %1115 = vrot.lane.b32.xlu0 %v4809_v47, %s2339_s11  ;;  %v4822_v33 = vld [vmem:[#allocation127_spill] sm:$0xff] }
 0x28a   : > { %v1211_v44 = vpop.permute.xlu2 %1210 }
 0x28b   : > { %v982_v50 = vpop.permute.xlu1 %981  ;;  %v1209_v63 = vpop.permute.xlu0 %1208 }
 0x28c   : > { %v1519_v51 = vsel %vm1501_vm10, %v1486_v8, %v1209_v63 }
 0x28d   : > { %2082 = vmatmul.msk.f32.gmra.mxu2 %vm1539_vm11, %v1519_v51 }
 0x290   : > { %1103 = vrot.lane.b32.xlu2 %v4813_v4, %s2339_s11  ;;  %v2207_v4 = vld [vmem:[%s2423_s5 + $0x90] sm:$0xff] }
 0x291   : > { %1001 = vrot.lane.b32.xlu1 %v3650_v26, %s2340_s12  ;;  %1228 = vrot.lane.b32.xlu0 %v4815_v38, %s2341_s13  ;;  %v1283_v43 = vsel %vm1270_vm2, %v2207_v4, %v4825_v61  ;;  %v4826_v38 = vld [vmem:[#allocation90_spill] sm:$0xff] }
 0x292   : > { %v996_v37 = vpop.permute.xlu2 %995  ;;  %v1316_v23 = vsel %vm1303_vm3, %v1283_v43, %v4826_v38 }
 0x293   : > { %v1096_v17 = vpop.permute.xlu1 %1095  ;;  %v1084_v52 = vpop.permute.xlu0 %1083 }
 0x294   : > { %v1480_v16 = vsel %vm1468_vm9, %v1447_v0, %v1096_v17  ;;  %v4827_v0 = vld [vmem:[#allocation121_spill] sm:$0xff]  ;;  %v263_v17 = vld [vmem:[%s2423_s5 + $0x198] sm:$0xff] }
 0x295   : > { %v1513_v26 = vsel %vm1501_vm10, %v1480_v16, %v1197_v40  ;;  %v1441_v40 = vsel %vm1435_vm8, %v1408_v58, %v982_v50  ;;  %v4828_v16 = vld [vmem:[#allocation71_spill] sm:$0xff]  ;;  %v1068_v1 = vrot.slane %v263_v17, 1 }
 0x296   : > { %2076 = vmatmul.msk.f32.gmra.mxu1 %vm1539_vm11, %v1513_v26  ;;  %v1474_v12 = vsel %vm1468_vm9, %v1441_v40, %v1084_v52  ;;  %v264_v52 = vld [vmem:[%s2423_s5 + $0x1a0] sm:$0xff]  ;;  %v4830_v26 = vld [vmem:[#allocation126_spill] sm:$0xff] }
 0x297   : > { %v1069_v31 = vrot.slane %v264_v52, 1  ;;  %v2208_v40 = vld [vmem:[%s2423_s5 + $0x48] sm:$0xff] }
 0x298   : > { %1204 = vrot.lane.b32.xlu2 %v4820_v20, %s2341_s13 }
 0x299   : > { %1027 = vrot.lane.b32.xlu1 %v2204_v10, %s2340_s12  ;;  %1015 = vrot.lane.b32.xlu0 %v3741_v41, %s2340_s12  ;;  %v4823_v41 = vld [vmem:[#allocation26_spill] sm:$0xff] }
 0x29a   : > { %v4081_v19 = vpop.permute.xlu2 %1009 }
 0x29b   : > { %v1185_v48 = vpop.permute.xlu1 %1184  ;;  %v1020_v13 = vpop.permute.xlu0 %1019 }
 0x29c   : > { %v1507_v49 = vsel %vm1501_vm10, %v1474_v12, %v1185_v48  ;;  %v1460_v30 = vsel %vm1435_vm8, %v3587_v21, %v1020_v13  ;;  %v1349_v21 = vsel %vm1336_vm4, %v1316_v23, %v4827_v0  ;;  %v4832_v12 = vld [vmem:[#allocation59_spill] sm:$0xff]  ;;  %v1455_v23 = vsel %vm1435_vm8, %v3692_v46, %v4081_v19 }
 0x29d   : > { %2070 = vmatmul.msk.f32.gmra.mxu0 %vm1539_vm11, %v1507_v49  ;;  %v1382_v35 = vsel %vm1369_vm5, %v1349_v21, %v4829_v53  ;;  %v1277_v48 = vsel %vm1270_vm2, %v2208_v40, %v4832_v12  ;;  %v1070_v49 = vsel %vm314_vm0, %v1068_v1, %v1069_v31 }
 0x29e   : > { %v1415_v22 = vsel %vm1402_vm6, %v1382_v35, %v3481_v42  ;;  %v4834_v42 = vld [vmem:[#allocation116_spill] sm:$0xff] }
 0x29f   : > { %v1448_v6 = vsel %vm1435_vm8, %v1415_v22, %v996_v37 }
 0x2a0   : > { %1218 = vrot.lane.b32.xlu2 %v4821_v15, %s2341_s13  ;;  %v4833_v15 = vld [vmem:[#allocation84_spill] sm:$0xff] }
 0x2a1   : > { %1129 = vrot.lane.b32.xlu1 %v4822_v33, %s2339_s11  ;;  %1117 = vrot.lane.b32.xlu0 %v4823_v41, %s2339_s11  ;;  %v1310_v33 = vsel %vm1303_vm3, %v1277_v48, %v4833_v15  ;;  %v4835_v41 = vld [vmem:[#allocation139_spill] sm:$0xff]  ;;  %v4838_v15 = vld [vmem:[#allocation58_spill] sm:$0xff] }
 0x2a2   : > { %v1199_v47 = vpop.permute.xlu2 %1198  ;;  %v1343_v37 = vsel %vm1336_vm4, %v1310_v33, %v4834_v42 }
 0x2a3   : > { %v1122_v8 = vpop.permute.xlu1 %1121  ;;  %v1110_v50 = vpop.permute.xlu0 %1109 }
 0x2a4   : > { %v1487_v63 = vsel %vm1468_vm9, %v1454_v54, %v1110_v50  ;;  %v1376_v54 = vsel %vm1369_vm5, %v1343_v37, %v4835_v41  ;;  %v4836_v50 = vld [vmem:[#allocation144_spill] sm:$0xff] }
 0x2a5   : > { %v1520_v51 = vsel %vm1501_vm10, %v1487_v63, %v1211_v44  ;;  %v1493_v44 = vsel %vm1468_vm9, %v1460_v30, %v1122_v8  ;;  %v265_v8 = vld [vmem:[%s2423_s5 + $0x1a8] sm:$0x3]  ;;  %v1409_v63 = vsel %vm1402_vm6, %v1376_v54, %v4836_v50  ;;  %v4839_v37 = vld [vmem:[#allocation96_spill] sm:$0xff] }
 0x2a6   : > { %2083 = vmatmul.msk.f32.gmra.mxu2 %vm1539_vm11, %v1520_v51  ;;  %v1071_v51 = vrot.slane %v265_v8, 1  ;;  %v1172_v38 = vrot.slane %v265_v8, 2  ;;  %v4841_v8 = vld [vmem:[#allocation138_spill] sm:$0xff] }
 0x2a8   : > { %1029 = vrot.lane.b32.xlu2 %v2205_v5, %s2340_s12  ;;  %v1072_v4 = vsel %vm314_vm0, %v1069_v31, %v1071_v51 }
 0x2a9   : > { %1017 = vrot.lane.b32.xlu1 %v2206_v27, %s2340_s12  ;;  %1230 = vrot.lane.b32.xlu0 %v4824_v28, %s2341_s13  ;;  %v1169_v27 = vrot.slane %v263_v17, 2  ;;  %v1170_v28 = vrot.slane %v264_v52, 2 }
 0x2aa   : > { %v4106_v3 = vpop.permute.xlu2 %1212 }
 0x2ab   : > { %v984_v56 = vpop.permute.xlu1 %983  ;;  %v1223_v39 = vpop.permute.xlu0 %1222  ;;  %v1171_v43 = vsel %vm491_vm1, %v1169_v27, %v1170_v28 }
 0x2ac   : > { %v1526_v36 = vsel %vm1501_vm10, %v1493_v44, %v1223_v39  ;;  %v1442_v5 = vsel %vm1435_vm8, %v1409_v63, %v984_v56 }
 0x2ad   : > { %2089 = vmatmul.msk.f32.vlgmr.msra.gmra.mxu3 %vm1539_vm11, %v1526_v36 }
 0x2b0   : > { %1220 = vrot.lane.b32.xlu2 %v4828_v16, %s2341_s13  ;;  %v1173_v16 = vsel %vm491_vm1, %v1170_v28, %v1172_v38 }
 0x2b1   : > { %1131 = vrot.lane.b32.xlu1 %v4830_v26, %s2339_s11  ;;  %1119 = vrot.lane.b32.xlu0 %v4831_v60, %s2339_s11 }
 0x2b2   : > { %v998_v10 = vpop.permute.xlu2 %997 }
 0x2b3   : > { %v1098_v62 = vpop.permute.xlu1 %1097  ;;  %v1086_v20 = vpop.permute.xlu0 %1085 }
 0x2b4   : > { %v1481_v58 = vsel %vm1468_vm9, %v1448_v6, %v1098_v62  ;;  %v1475_v30 = vsel %vm1468_vm9, %v1442_v5, %v1086_v20 }
 0x2b5   : > { %v1514_v13 = vsel %vm1501_vm10, %v1481_v58, %v1199_v47  ;;  %v4837_v47 = vld [vmem:[#allocation143_spill] sm:$0xff] }
 0x2b6   : > { %2077 = vmatmul.msk.f32.gmra.mxu1 %vm1539_vm11, %v1514_v13 }
 0x2b8   : > { %1133 = vrot.lane.b32.xlu2 %v1070_v49, %s2339_s11  ;;  %v2209_v49 = vld [vmem:[%s2423_s5 + $0x50] sm:$0xff]  ;;  %s2102_s5 = sshll.u32 %s2389_s19, 8 }
 0x2b9   : > { %1031 = vrot.lane.b32.xlu1 %v263_v17, %s2340_s12  ;;  %1232 = vrot.lane.b32.xlu0 %v4837_v47, %s2341_s13  ;;  %v1278_v33 = vsel %vm1270_vm2, %v2209_v49, %v4838_v15 }
 0x2ba   : > { %v1012_v61 = vpop.permute.xlu2 %1011  ;;  %v1311_v41 = vsel %vm1303_vm3, %v1278_v33, %v4839_v37 }
 0x2bb   : > { %v1187_v44 = vpop.permute.xlu1 %1186  ;;  %v1022_v39 = vpop.permute.xlu0 %1021 }
 0x2bc   : > { %v1508_v36 = vsel %vm1501_vm10, %v1475_v30, %v1187_v44  ;;  %v1461_v46 = vsel %vm1435_vm8, %v3776_v11, %v1022_v39  ;;  %v1449_v11 = vsel %vm1435_vm8, %v3593_v2, %v998_v10  ;;  %v4840_v2 = vld [vmem:[#allocation9_spill] sm:$0xff] }
 0x2bd   : > { %2071 = vmatmul.msk.f32.gmra.mxu0 %vm1539_vm11, %v1508_v36  ;;  %v1344_v10 = vsel %vm1336_vm4, %v1311_v41, %v4840_v2 }
 0x2be   : > { %v1377_v50 = vsel %vm1369_vm5, %v1344_v10, %v4841_v8 }
 0x2bf   : > { %v1410_v63 = vsel %vm1402_vm6, %v1377_v50, %v3527_v57  ;;  %v1456_v57 = vsel %vm1435_vm8, %v3689_v9, %v1012_v61 }
 0x2c0   : > { %1135 = vrot.lane.b32.xlu2 %v1072_v4, %s2339_s11 }
 0x2c1   : > { %1033 = vrot.lane.b32.xlu1 %v264_v52, %s2340_s12  ;;  %1234 = vrot.lane.b32.xlu0 %v1171_v43, %s2341_s13 }
 0x2c2   : > { %v1657_v56 = vpop.f32.mrf.mxu0  ;;  %v1201_v53 = vpop.permute.xlu2 %1200 }
 0x2c3   : > { %1753 = vst [vmem:[%s4167_s22] sm:$0xff] %v1657_v56  ;;  %v1124_v0 = vpop.permute.xlu1 %1123  ;;  %v1112_v21 = vpop.permute.xlu0 %1111  ;;  %v1823_v35 = vmul.f32 %v1657_v56, %v1657_v56 }
 0x2c4   : > { %v1488_v17 = vsel %vm1468_vm9, %v1455_v23, %v1112_v21  ;;  %v1494_v26 = vsel %vm1468_vm9, %v1461_v46, %v1124_v0 }
 0x2c5   : > { %v1521_v52 = vsel %vm1501_vm10, %v1488_v17, %v4106_v3 }
 0x2c6   : > { %2084 = vmatmul.msk.f32.gmra.mxu2 %vm1539_vm11, %v1521_v52 }
 0x2c9   : > { %1236 = vrot.lane.b32.xlu0 %v1173_v16, %s2341_s13  ;;  %s1913_s13 = scalar_lea.hbm %s4433_s2, %s2102_s5 }
 0x2ca   : > { %v1660_v19 = vpop.f32.mrf.mxu0  ;;  %v1215_v62 = vpop.permute.xlu2 %1214  ;;  %s1916_s27 = sshll.u32 %s1913_s13, 4  ;;  %s1917_s27 = int_to_ptr.hbm [resolvable:$true] %s1916_s27 }
 0x2cb   : > { %1754 = vst [vmem:[%s4167_s22 + $0x8] sm:$0xff] %v1660_v19  ;;  %v1785_v60 = vadd.f32 %v1660_v19, %v1657_v56  ;;  %v1824_v1 = vmul.f32 %v1660_v19, %v1660_v19  ;;  %v986_v3 = vpop.permute.xlu1 %985  ;;  %v1225_v31 = vpop.permute.xlu0 %1224  ;;  %s2224_s29 = sshra.s32 %s1917_s27, 4  ;;  %s2225_s29 = int_to_ptr.hbm [resolvable:$true] %s2224_s29 }
 0x2cc   : > { %v1527_v22 = vsel %vm1501_vm10, %v1494_v26, %v1225_v31  ;;  %v1443_v47 = vsel %vm1435_vm8, %v1410_v63, %v986_v3  ;;  %s2226_s30 = scalar_lea.hbm %s2225_s29, 256  ;;  %p2231_p0 = scmp.lt.s32.totalorder %s2225_s29, %s4433_s2 }
 0x2cd   : > { %v1855_v6 = vadd.f32 %v1824_v1, %v1823_v35  ;;  %2090 = vmatmul.msk.f32.gmra.mxu3 %vm1539_vm11, %v1527_v22  ;;  %p2227_p11 = scmp.ne.s32.totalorder %s2225_s29, %s2226_s30  ;;  %p2232_p1 = scmp.lt.s32.totalorder %s2230_s9, %s2226_s30 }
 0x2cf   : > { %p2228_p12 = pnand %p2227_p11, %p2408_p5  ;;  %p2233_p2 = por %p2232_p1, %p2231_p0 }
 0x2d1   : > { %p2229_p13 = pneg %p2228_p12 }
 0x2d2   : > { %v1102_v44 = vpop.permute.xlu2 %1101 }
 0x2d3   : > { %v1100_v20 = vpop.permute.xlu1 %1099  ;;  %v1663_v58 = vpop.f32.mrf.mxu0  ;;  %p2234_p3 = pnand %p2233_p2, %p2229_p13 }
 0x2d4   : > { %v1482_v40 = vsel %vm1468_vm9, %v1449_v11, %v1100_v20  ;;  %1755 = vst [vmem:[%s4167_s22 + $0x10] sm:$0xff] %v1663_v58  ;;  %v1786_v12 = vadd.f32 %v1785_v60, %v1663_v58  ;;  %v1825_v48 = vmul.f32 %v1663_v58, %v1663_v58  ;;  %v1088_v13 = vpop.permute.xlu0 %1087 }
 0x2d5   : > { %v1515_v42 = vsel %vm1501_vm10, %v1482_v40, %v1201_v53  ;;  %v1476_v5 = vsel %vm1468_vm9, %v1443_v47, %v1088_v13 }
 0x2d6   : > { %v1856_v54 = vadd.f32 %v1855_v6, %v1825_v48  ;;  %2078 = vmatmul.msk.f32.gmra.mxu1 %vm1539_vm11, %v1515_v42 }
 0x2da   : > { %v4200_v51 = vpop.f32.mrf.mxu1  ;;  %v1203_v56 = vpop.permute.xlu2 %1202 }
 0x2db   : > { %1761 = vst [vmem:[%s4167_s22 + $0x40] sm:$0xff] %v4200_v51  ;;  %v1189_v27 = vpop.permute.xlu1 %1188 }
 0x2dc   : > { %v1024_v28 = vpop.permute.xlu0 %1023  ;;  %v1509_v30 = vsel %vm1501_vm10, %v1476_v5, %v1189_v27 }
 0x2dd   : > { %2072 = vmatmul.msk.f32.gmra.mxu0 %vm1539_vm11, %v1509_v30  ;;  %v1462_v0 = vsel %vm1435_vm8, %v3773_v32, %v1024_v28 }
 0x2e2   : > { %v1217_v35 = vpop.permute.xlu2 %1216 }
 0x2e3   : > { %v1126_v39 = vpop.permute.xlu1 %1125 }
 0x2e4   : > { %v1114_v36 = vpop.permute.xlu0 %1113  ;;  %v1495_v9 = vsel %vm1468_vm9, %v1462_v0, %v1126_v39 }
 0x2e5   : > { %v1489_v4 = vsel %vm1468_vm9, %v1456_v57, %v1114_v36 }
 0x2e6   : > { %v1522_v43 = vsel %vm1501_vm10, %v1489_v4, %v1215_v62 }
 0x2e7   : > { %2085 = vmatmul.msk.f32.gmra.mxu2 %vm1539_vm11, %v1522_v43 }
 0x2ea   : > { %v1666_v38 = vpop.f32.mrf.mxu0  ;;  %v4212_v23 = vpop.f32.mrf.mxu1 }
 0x2eb   : > { %1756 = vst [vmem:[%s4167_s22 + $0x18] sm:$0xff] %v1666_v38  ;;  %v1787_v21 = vadd.f32 %v1786_v12, %v1666_v38  ;;  %v1826_v17 = vmul.f32 %v1666_v38, %v1666_v38  ;;  %v1000_v52 = vpop.permute.xlu1 %999 }
 0x2ec   : > { %1762 = vst [vmem:[%s4167_s22 + $0x48] sm:$0xff] %v4212_v23  ;;  %v1450_v61 = vsel %vm1435_vm8, %v3590_v29, %v1000_v52  ;;  %v1227_v16 = vpop.permute.xlu0 %1226  ;;  %v1104_v29 = vpop.permute.xlu2 %1103 }
 0x2ed   : > { %v1857_v53 = vadd.f32 %v1856_v54, %v1826_v17  ;;  %v1528_v46 = vsel %vm1501_vm10, %v1495_v9, %v1227_v16  ;;  %v1483_v19 = vsel %vm1468_vm9, %v1450_v61, %v1102_v44 }
 0x2ee   : > { %2091 = vmatmul.msk.f32.gmra.mxu3 %vm1539_vm11, %v1528_v46  ;;  %v1516_v32 = vsel %vm1501_vm10, %v1483_v19, %v1203_v56 }
 0x2ef   : > { %2079 = vmatmul.msk.f32.gmra.mxu1 %vm1539_vm11, %v1516_v32 }
 0x2f3   : > { %v1026_v26 = vpop.permute.xlu1 %1025 }
 0x2f4   : > { %v1014_v60 = vpop.permute.xlu0 %1013  ;;  %v1463_v58 = vsel %vm1435_vm8, %v3635_v45, %v1026_v26  ;;  %v1205_v15 = vpop.permute.xlu2 %1204 }
 0x2f5   : > { %v1457_v31 = vsel %vm1435_vm8, %v3549_v24, %v1014_v60 }
 0x2f8   : > { %v4227_v1 = vpop.f32.mrf.mxu2 }
 0x2f9   : > { %1769 = vst [vmem:[%s4167_s22 + $0x80] sm:$0xff] %v4227_v1 }
 0x2fb   : > { %v1128_v3 = vpop.permute.xlu1 %1127 }
 0x2fc   : > { %v1116_v22 = vpop.permute.xlu0 %1115  ;;  %v1496_v24 = vsel %vm1468_vm9, %v1463_v58, %v1128_v3 }
 0x2fd   : > { %v1490_v6 = vsel %vm1468_vm9, %v1457_v31, %v1116_v22 }
 0x2fe   : > { %v1523_v62 = vsel %vm1501_vm10, %v1490_v6, %v1217_v35 }
 0x2ff   : > { %2086 = vmatmul.msk.f32.gmra.mxu2 %vm1539_vm11, %v1523_v62 }
 0x302   : > { %v1669_v11 = vpop.f32.mrf.mxu0  ;;  %v4236_v20 = vpop.f32.mrf.mxu1 }
 0x303   : > { %1757 = vst [vmem:[%s4167_s22 + $0x20] sm:$0xff] %v1669_v11  ;;  %v1788_v40 = vadd.f32 %v1787_v21, %v1669_v11  ;;  %v1827_v12 = vmul.f32 %v1669_v11, %v1669_v11  ;;  %v1002_v48 = vpop.permute.xlu1 %1001 }
 0x304   : > { %1763 = vst [vmem:[%s4167_s22 + $0x50] sm:$0xff] %v4236_v20  ;;  %v1451_v13 = vsel %vm1435_vm8, %v3504_v25, %v1002_v48  ;;  %v1229_v49 = vpop.permute.xlu0 %1228  ;;  %v1219_v25 = vpop.permute.xlu2 %1218 }
 0x305   : > { %v1858_v33 = vadd.f32 %v1857_v53, %v1827_v12  ;;  %v1529_v42 = vsel %vm1501_vm10, %v1496_v24, %v1229_v49  ;;  %v1484_v45 = vsel %vm1468_vm9, %v1451_v13, %v1104_v29 }
 0x306   : > { %2092 = vmatmul.msk.f32.gmra.mxu3 %vm1539_vm11, %v1529_v42  ;;  %v1517_v37 = vsel %vm1501_vm10, %v1484_v45, %v1205_v15  ;;  %v1831_v15 = vmul.f32 %v4200_v51, %v4200_v51  ;;  %v1832_v45 = vmul.f32 %v4212_v23, %v4212_v23 }
 0x307   : > { %2080 = vmatmul.msk.f32.gmra.mxu1 %vm1539_vm11, %v1517_v37 }
 0x30b   : > { %v1028_v41 = vpop.permute.xlu1 %1027 }
 0x30c   : > { %v1016_v54 = vpop.permute.xlu0 %1015  ;;  %v1030_v28 = vpop.permute.xlu2 %1029  ;;  %v1464_v30 = vsel %vm1435_vm8, %v3807_v55, %v1028_v41 }
 0x30d   : > { %v1458_v50 = vsel %vm1435_vm8, %v3738_v34, %v1016_v54  ;;  %v1465_v9 = vsel %vm1435_vm8, %v3804_v7, %v1030_v28  ;;  %v1833_v54 = vmul.f32 %v4236_v20, %v4236_v20 }
 0x310   : > { %v4251_v2 = vpop.f32.mrf.mxu2 }
 0x311   : > { %1770 = vst [vmem:[%s4167_s22 + $0x88] sm:$0xff] %v4251_v2 }
 0x313   : > { %v1130_v10 = vpop.permute.xlu1 %1129  ;;  %v4255_v8 = vpop.f32.mrf.mxu1 }
 0x314   : > { %1764 = vst [vmem:[%s4167_s22 + $0x58] sm:$0xff] %v4255_v8  ;;  %v1118_v63 = vpop.permute.xlu0 %1117  ;;  %v1497_v34 = vsel %vm1468_vm9, %v1464_v30, %v1130_v10  ;;  %v1221_v38 = vpop.permute.xlu2 %1220 }
 0x315   : > { %v1491_v47 = vsel %vm1468_vm9, %v1458_v50, %v1118_v63  ;;  %v1834_v50 = vmul.f32 %v4255_v8, %v4255_v8 }
 0x316   : > { %v1524_v5 = vsel %vm1501_vm10, %v1491_v47, %v1219_v25 }
 0x317   : > { %2087 = vmatmul.msk.f32.gmra.mxu2 %vm1539_vm11, %v1524_v5 }
 0x31a   : > { %v1672_v27 = vpop.f32.mrf.mxu0 }
 0x31b   : > { %1758 = vst [vmem:[%s4167_s22 + $0x28] sm:$0xff] %v1672_v27  ;;  %v1789_v44 = vadd.f32 %v1788_v40, %v1672_v27  ;;  %v1828_v39 = vmul.f32 %v1672_v27, %v1672_v27  ;;  %v1018_v57 = vpop.permute.xlu1 %1017 }
 0x31c   : > { %v1231_v36 = vpop.permute.xlu0 %1230  ;;  %v1459_v0 = vsel %vm1435_vm8, %v3735_v14, %v1018_v57  ;;  %v1134_v46 = vpop.permute.xlu2 %1133 }
 0x31d   : > { %v1859_v4 = vadd.f32 %v1858_v33, %v1828_v39  ;;  %v1530_v43 = vsel %vm1501_vm10, %v1497_v34, %v1231_v36 }
 0x31e   : > { %2093 = vmatmul.msk.f32.gmra.mxu3 %vm1539_vm11, %v1530_v43 }
 0x323   : > { %v1132_v56 = vpop.permute.xlu1 %1131 }
 0x324   : > { %v1120_v55 = vpop.permute.xlu0 %1119  ;;  %v1498_v61 = vsel %vm1468_vm9, %v1465_v9, %v1132_v56  ;;  %v1136_v31 = vpop.permute.xlu2 %1135 }
 0x325   : > { %v1492_v21 = vsel %vm1468_vm9, %v1459_v0, %v1120_v55  ;;  %v1839_v0 = vmul.f32 %v4227_v1, %v4227_v1 }
 0x326   : > { %v1525_v17 = vsel %vm1501_vm10, %v1492_v21, %v1221_v38 }
 0x327   : > { %2088 = vmatmul.msk.f32.gmra.mxu2 %vm1539_vm11, %v1525_v17  ;;  %v1840_v17 = vmul.f32 %v4251_v2, %v4251_v2 }
 0x329   : > { %v4275_v52 = vpop.f32.mrf.mxu2 }
 0x32a   : > { %1771 = vst [vmem:[%s4167_s22 + $0x90] sm:$0xff] %v4275_v52 }
 0x32b   : > { %v1032_v16 = vpop.permute.xlu1 %1031 }
 0x32c   : > { %v1233_v14 = vpop.permute.xlu0 %1232  ;;  %v1466_v32 = vsel %vm1435_vm8, %v3683_v18, %v1032_v16 }
 0x32d   : > { %v1531_v53 = vsel %vm1501_vm10, %v1498_v61, %v1233_v14  ;;  %v1499_v7 = vsel %vm1468_vm9, %v1466_v32, %v1134_v46  ;;  %v1841_v14 = vmul.f32 %v4275_v52, %v4275_v52 }
 0x32e   : > { %2094 = vmatmul.msk.f32.gmra.mxu3 %vm1539_vm11, %v1531_v53 }
 0x330   : > { %v4284_v19 = vpop.f32.mrf.mxu3 }
 0x331   : > { %1777 = vst [vmem:[%s4167_s22 + $0xc0] sm:$0xff] %v4284_v19 }
 0x333   : > { %v1693_v35 = vpop.f32.mrf.mxu1  ;;  %v1034_v29 = vpop.permute.xlu1 %1033 }
 0x334   : > { %1765 = vst [vmem:[%s4167_s22 + $0x60] sm:$0xff] %v1693_v35  ;;  %v1235_v26 = vpop.permute.xlu0 %1234  ;;  %v1467_v3 = vsel %vm1435_vm8, %v3836_v59, %v1034_v29  ;;  %v1835_v47 = vmul.f32 %v1693_v35, %v1693_v35 }
 0x335   : > { %v1532_v60 = vsel %vm1501_vm10, %v1499_v7, %v1235_v26  ;;  %v1500_v62 = vsel %vm1468_vm9, %v1467_v3, %v1136_v31 }
 0x336   : > { %2095 = vmatmul.msk.f32.gmra.mxu3 %vm1539_vm11, %v1532_v60 }
 0x33a   : > { %v1675_v18 = vpop.f32.mrf.mxu0 }
 0x33b   : > { %1759 = vst [vmem:[%s4167_s22 + $0x30] sm:$0xff] %v1675_v18  ;;  %v1790_v22 = vadd.f32 %v1789_v44, %v1675_v18  ;;  %v1829_v6 = vmul.f32 %v1675_v18, %v1675_v18 }
 0x33c   : > { %v1237_v11 = vpop.permute.xlu0 %1236 }
 0x33d   : > { %v1860_v58 = vadd.f32 %v1859_v4, %v1829_v6  ;;  %v1533_v40 = vsel %vm1501_vm10, %v1500_v62, %v1237_v11 }
 0x33e   : > { %2096 = vmatmul.msk.f32.gmra.mxu3 %vm1539_vm11, %v1533_v40 }
 0x349   : > { %v1714_v12 = vpop.f32.mrf.mxu2 }
 0x34a   : > { %1772 = vst [vmem:[%s4167_s22 + $0x98] sm:$0xff] %v1714_v12  ;;  %v1842_v32 = vmul.f32 %v1714_v12, %v1714_v12 }
 0x350   : > { %v4301_v48 = vpop.f32.mrf.mxu3 }
 0x351   : > { %1778 = vst [vmem:[%s4167_s22 + $0xc8] sm:$0xff] %v4301_v48 }
 0x353   : > { %v1696_v59 = vpop.f32.mrf.mxu1 }
 0x354   : > { %1766 = vst [vmem:[%s4167_s22 + $0x68] sm:$0xff] %v1696_v59  ;;  %v1836_v27 = vmul.f32 %v1696_v59, %v1696_v59 }
 0x35a   : > { %v1678_v24 = vpop.f32.mrf.mxu0 }
 0x35b   : > { %1760 = vst [vmem:[%s4167_s22 + $0x38] sm:$0xff] %v1678_v24  ;;  %v1791_v13 = vadd.f32 %v1790_v22, %v1678_v24  ;;  %v1830_v49 = vmul.f32 %v1678_v24, %v1678_v24 }
 0x35d   : > { %v1792_v33 = vadd.f32 %v1791_v13, %v4200_v51  ;;  %v1861_v42 = vadd.f32 %v1860_v58, %v1830_v49  ;;  %v1848_v13 = vmul.f32 %v4301_v48, %v4301_v48 }
 0x35f   : > { %v1793_v37 = vadd.f32 %v1792_v33, %v4212_v23  ;;  %v1862_v41 = vadd.f32 %v1861_v42, %v1831_v15 }
 0x361   : > { %v1794_v25 = vadd.f32 %v1793_v37, %v4236_v20  ;;  %v1863_v10 = vadd.f32 %v1862_v41, %v1832_v45 }
 0x363   : > { %v1864_v51 = vadd.f32 %v1863_v10, %v1833_v54  ;;  %v1795_v63 = vadd.f32 %v1794_v25, %v4255_v8 }
 0x365   : > { %v1796_v5 = vadd.f32 %v1795_v63, %v1693_v35  ;;  %v1865_v23 = vadd.f32 %v1864_v51, %v1834_v50 }
 0x367   : > { %v1797_v28 = vadd.f32 %v1796_v5, %v1696_v59  ;;  %v1866_v30 = vadd.f32 %v1865_v23, %v1835_v47 }
 0x369   : > { %v1867_v44 = vadd.f32 %v1866_v30, %v1836_v27 }
 0x36a   : > { %v1717_v39 = vpop.f32.mrf.mxu2 }
 0x36b   : > { %1773 = vst [vmem:[%s4167_s22 + $0xa0] sm:$0xff] %v1717_v39  ;;  %v1843_v7 = vmul.f32 %v1717_v39, %v1717_v39 }
 0x36c   : > { %v1699_v20 = vpop.f32.mrf.mxu1 }
 0x36d   : > { %1767 = vst [vmem:[%s4167_s22 + $0x70] sm:$0xff] %v1699_v20  ;;  %v1837_v34 = vmul.f32 %v1699_v20, %v1699_v20  ;;  %v1798_v4 = vadd.f32 %v1797_v28, %v1699_v20 }
 0x36f   : > { %v1868_v43 = vadd.f32 %v1867_v44, %v1837_v34 }
 0x371   : > { %v1735_v57 = vpop.f32.mrf.mxu3 }
 0x372   : > { %1779 = vst [vmem:[%s4167_s22 + $0xd0] sm:$0xff] %v1735_v57  ;;  %v1849_v33 = vmul.f32 %v1735_v57, %v1735_v57 }
 0x382   : > { %v1720_v36 = vpop.f32.mrf.mxu2 }
 0x383   : > { %1774 = vst [vmem:[%s4167_s22 + $0xa8] sm:$0xff] %v1720_v36  ;;  %v1844_v31 = vmul.f32 %v1720_v36, %v1720_v36 }
 0x384   : > { %v1702_v8 = vpop.f32.mrf.mxu1 }
 0x385   : > { %1768 = vst [vmem:[%s4167_s22 + $0x78] sm:$0xff] %v1702_v8  ;;  %v1799_v56 = vadd.f32 %v1798_v4, %v1702_v8  ;;  %v1838_v38 = vmul.f32 %v1702_v8, %v1702_v8 }
 0x387   : > { %v1800_v55 = vadd.f32 %v1799_v56, %v4227_v1  ;;  %v1869_v21 = vadd.f32 %v1868_v43, %v1838_v38 }
 0x389   : > { %v1801_v9 = vadd.f32 %v1800_v55, %v4251_v2  ;;  %v1870_v61 = vadd.f32 %v1869_v21, %v1839_v0  ;;  %v1738_v16 = vpop.f32.mrf.mxu3 }
 0x38a   : > { %1780 = vst [vmem:[%s4167_s22 + $0xd8] sm:$0xff] %v1738_v16  ;;  %v1850_v54 = vmul.f32 %v1738_v16, %v1738_v16 }
 0x38b   : > { %v1802_v53 = vadd.f32 %v1801_v9, %v4275_v52  ;;  %v1871_v46 = vadd.f32 %v1870_v61, %v1840_v17 }
 0x38d   : > { %v1872_v35 = vadd.f32 %v1871_v46, %v1841_v14  ;;  %v1803_v1 = vadd.f32 %v1802_v53, %v1714_v12  ;;  %v1847_v12 = vmul.f32 %v4284_v19, %v4284_v19 }
 0x38f   : > { %v1804_v26 = vadd.f32 %v1803_v1, %v1717_v39  ;;  %v1873_v60 = vadd.f32 %v1872_v35, %v1842_v32 }
 0x391   : > { %v1874_v29 = vadd.f32 %v1873_v60, %v1843_v7  ;;  %v1805_v18 = vadd.f32 %v1804_v26, %v1720_v36 }
 0x393   : > { %v1875_v62 = vadd.f32 %v1874_v29, %v1844_v31 }
 0x39a   : > { %v1723_v3 = vpop.f32.mrf.mxu2 }
 0x39b   : > { %1775 = vst [vmem:[%s4167_s22 + $0xb0] sm:$0xff] %v1723_v3  ;;  %v1845_v22 = vmul.f32 %v1723_v3, %v1723_v3  ;;  %v1806_v6 = vadd.f32 %v1805_v18, %v1723_v3 }
 0x39d   : > { %v1876_v11 = vadd.f32 %v1875_v62, %v1845_v22 }
 0x3a1   : > { %v1741_v2 = vpop.f32.mrf.mxu3 }
 0x3a2   : > { %1781 = vst [vmem:[%s4167_s22 + $0xe0] sm:$0xff] %v1741_v2 }
 0x3aa   : > { %v1726_v52 = vpop.f32.mrf.mxu2 }
 0x3ab   : > { %1776 = vst [vmem:[%s4167_s22 + $0xb8] sm:$0xff] %v1726_v52  ;;  %v1807_v58 = vadd.f32 %v1806_v6, %v1726_v52  ;;  %v1846_v40 = vmul.f32 %v1726_v52, %v1726_v52 }
 0x3ad   : > { %v1808_v59 = vadd.f32 %v1807_v58, %v4284_v19  ;;  %v1877_v24 = vadd.f32 %v1876_v11, %v1846_v40  ;;  %v1851_v19 = vmul.f32 %v1741_v2, %v1741_v2 }
 0x3af   : > { %v1809_v49 = vadd.f32 %v1808_v59, %v4301_v48  ;;  %v1878_v15 = vadd.f32 %v1877_v24, %v1847_v12 }
 0x3b1   : > { %v1810_v42 = vadd.f32 %v1809_v49, %v1735_v57  ;;  %v1879_v45 = vadd.f32 %v1878_v15, %v1848_v13  ;;  %v1744_v37 = vpop.f32.mrf.mxu3 }
 0x3b2   : > { %1782 = vst [vmem:[%s4167_s22 + $0xe8] sm:$0xff] %v1744_v37  ;;  %v1852_v47 = vmul.f32 %v1744_v37, %v1744_v37 }
 0x3b3   : > { %v1880_v41 = vadd.f32 %v1879_v45, %v1849_v33  ;;  %v1811_v25 = vadd.f32 %v1810_v42, %v1738_v16 }
 0x3b5   : > { %v1881_v10 = vadd.f32 %v1880_v41, %v1850_v54  ;;  %v1812_v50 = vadd.f32 %v1811_v25, %v1741_v2 }
 0x3b7   : > { %v1882_v63 = vadd.f32 %v1881_v10, %v1851_v19  ;;  %v1813_v48 = vadd.f32 %v1812_v50, %v1744_v37 }
 0x3b9   : > { %v1747_v51 = vpop.f32.mrf.mxu3  ;;  %v1883_v5 = vadd.f32 %v1882_v63, %v1852_v47 }
 0x3ba   : > { %1783 = vst [vmem:[%s4167_s22 + $0xf0] sm:$0xff] %v1747_v51  ;;  %v1853_v23 = vmul.f32 %v1747_v51, %v1747_v51  ;;  %v1814_v27 = vadd.f32 %v1813_v48, %v1747_v51 }
 0x3bc   : > { %v1884_v30 = vadd.f32 %v1883_v5, %v1853_v23 }
 0x3c1   : > { %v1750_v28 = vpop.f32.mrf.mxu3 }
 0x3c2   : > { %1784 = vst [vmem:[%s4167_s22 + $0xf8] sm:$0xff] %v1750_v28  ;;  %v1815_v44 = vadd.f32 %v1814_v27, %v1750_v28  ;;  %v1854_v39 = vmul.f32 %v1750_v28, %v1750_v28 }
 0x3c3   : > { %2237 = shalt.err (!%p2234_p3)
}
 0x3c4   : > { %s2342_s22 = smov 128   ;;  %v1816_v20 = vrot.slane %v1815_v44, 4  ;;  %v1885_v57 = vadd.f32 %v1884_v30, %v1854_v39  ;;  %s1928_s13 = scalar_lea.hbm %s4434_s3, %s2389_s19 }
 0x3c5   : > { %2119 = dma.vmem_to_hbm [thread:$0]  (%p2408_p5), %s1915_s23, 4096, %s1917_s27, %s1894_s28, %s2342_s22, %s2342_s22, %s2335_s7  }
 0x3c6   : > { %v1817_v34 = vadd.f32 %v1816_v20, %v1815_v44  ;;  %v1886_v36 = vrot.slane %v1885_v57, 4  ;;  %s1898_s29 = sand.u32 1, %s2389_s19   ;;  %s1941_s8 = scalar_lea.hbm %s4435_s4, %s2389_s19 }
 0x3c7   : > { %s200_s9 = scalar_lea.vmem [#allocation4], %s4153_s10  ;;  %s4375_s23 = sshll.u32 %s1928_s13, 4  ;;  %s1933_s23 = int_to_ptr.hbm [resolvable:$true] %s4375_s23 }
 0x3c8   : > { %v1818_v4 = vrot.slane %v1817_v34, 2  ;;  %v1887_v8 = vadd.f32 %v1886_v36, %v1885_v57  ;;  %s4373_s7 = sshll.u32 %s200_s9, 4  ;;  %s206_s27 = scalar_lea.vmem [#allocation6], %s4153_s10  ;;  %s1931_s7 = int_to_ptr.vmem [resolvable:$true] %s4373_s7 }
 0x3c9   : > { %s4378_s28 = sshll.u32 %s206_s27, 4  ;;  %s4380_s14 = sshll.u32 %s1941_s8, 4  ;;  %s1944_s28 = int_to_ptr.vmem [resolvable:$true] %s4378_s28  ;;  %s1946_s14 = int_to_ptr.hbm [resolvable:$true] %s4380_s14 }
 0x3ca   : > { %v1819_v43 = vadd.f32 %v1818_v4, %v1817_v34  ;;  %v1888_v56 = vrot.slane %v1887_v8, 2  ;;  %s1899_s19 = scalar_lea.sflag [#allocation5], %s1898_s29  ;;  %s2252_s5 = sshra.s32 %s1933_s23, 4  ;;  %s2253_s5 = int_to_ptr.hbm [resolvable:$true] %s2252_s5 }
 0x3cb   : > { %s2254_s22 = scalar_lea.hbm %s2253_s5, 1  ;;  %s2258_s12 = scalar_lea.hbm %s4434_s3, 2 }
 0x3cc   : > { %v1889_v38 = vadd.f32 %v1888_v56, %v1887_v8  ;;  %v1820_v0 = vrot.slane %v1819_v43, 1  ;;  %p2255_p4 = scmp.ne.s32.totalorder %s2253_s5, %s2254_s22  ;;  %p2259_p9 = scmp.lt.s32.totalorder %s2253_s5, %s4434_s3 }
 0x3cd   : > { %p2260_p10 = scmp.lt.s32.totalorder %s2258_s12, %s2254_s22 }
 0x3ce   : > { %v1821_v55 = vadd.f32 %v1820_v0, %v1819_v43  ;;  %v1890_v21 = vrot.slane %v1889_v38, 1  ;;  %p2256_p7 = pnand %p2255_p4, %p2408_p5 }
 0x3cf   : > { %p2261_p11 = por %p2260_p10, %p2259_p9 }
 0x3d0   : > { %1822 = vst [vmem:[%s200_s9] sm:$0x1] %v1821_v55  ;;  %v1891_v17 = vadd.f32 %v1890_v21, %v1889_v38  ;;  %p2257_p8 = pneg %p2256_p7 }
 0x3d2   : > { %p2262_p12 = pnand %p2261_p11, %p2257_p8 }
 0x3d4   : > { %2265 = shalt.err (!%p2262_p12)
}
 0x3d5   : > { %2120 = dma.vmem_to_hbm [thread:$0]  (%p2408_p5), %s1931_s7, 16, %s1933_s23, %s1899_s19   ;;  %1892 = vst [vmem:[%s206_s27] sm:$0x1] %v1891_v17 }
 0x3d6   : > { %s2280_s29 = sshra.s32 %s1946_s14, 4  ;;  %s2286_s5 = scalar_lea.hbm %s4435_s4, 2  ;;  %s2281_s29 = int_to_ptr.hbm [resolvable:$true] %s2280_s29 }
 0x3d7   : > { %s2282_s6 = scalar_lea.hbm %s2281_s29, 1  ;;  %p2287_p2 = scmp.lt.s32.totalorder %s2281_s29, %s4435_s4 }
 0x3d8   : > { %p2283_p13 = scmp.ne.s32.totalorder %s2281_s29, %s2282_s6  ;;  %p2288_p3 = scmp.lt.s32.totalorder %s2286_s5, %s2282_s6 }
 0x3da   : > { %p2284_p0 = pnand %p2283_p13, %p2408_p5  ;;  %p2289_p4 = por %p2288_p3, %p2287_p2 }
 0x3dc   : > { %p2285_p1 = pneg %p2284_p0 }
 0x3de   : > { %p2290_p7 = pnand %p2289_p4, %p2285_p1 }
 0x3e0   : > { %2293 = shalt.err (!%p2290_p7)
}
 0x3e1   : > { %2121 = dma.vmem_to_hbm [thread:$0]  (%p2408_p5), %s1944_s28, 16, %s1946_s14, %s1899_s19  }
 0x3e2 PF: > { %p2135_p8 = scmp.ge.s32.totalorder %s2332_s18, 2  ;;  %s1957_s7 = sand.u32 1, %s2320_s15  }
 0x3e3   : > { %s1958_s23 = scalar_lea.sflag [#allocation3], %s1957_s7 }
 0x3e4   : > { %p2126_p9 = pnand %p2135_p8, %p2412_p6 }
 0x3e6   : > { %p2127_p10 = pneg %p2126_p9 }
 0x3e8   : > { %2311 = dma.done.wait (%p2127_p10), %s1958_s23, 4096  }
 0x3e9   : > { %2313 = vsyncadd (%p2127_p10), %s1958_s23, 4294963200  ;;  %s1967_s25 = sand.u32 1, %s2058_s20  }
 0x3ea   : > { %s1968_s27 = scalar_lea.sflag [#allocation5], %s1967_s25 }
 0x3eb   : > { %2315 = dma.done.wait (%p2127_p10), %s1968_s27, 32  }
 0x3ec   : > { %2317 = vsyncadd (%p2127_p10), %s1968_s27, 4294967264  ;;  %p18_p5 = scmp.ge.s32.totalorder %s2393_s21, 4   ;;  %s4842_s15 = smov %s2324_s16 }
 0x3ed   : > { %s4843_s16 = smov %s2328_s17  ;;  %s4844_s17 = smov %s2406_s24 }
 0x3ee   : > { %s4845_s18 = smov %s2393_s21  ;;  %20 = sbr.rel (!%p18_p5) target bundleno = 5 (0x5), region = 95 }
 0x3f3   :  { %1982 = vsyncpa [#allocation3], 1 }
 0x3f4   :  { %1984 = vsyncpa [#allocation3 + $0x1], 1 }
 0x3f5   :  { %1985 = vsyncpa [#allocation5], 1 }
 0x3f6   :  { %1987 = vsyncpa [#allocation5 + $0x1], 1 }

</bundles_post_ra>
